<compile_context>
chip_gen: v7x
topology: tpu7x:2x2x1
jax: 0.10.0
libtpu: 0.0.40
codegen_flags: <defaults>
</compile_context>

<pallas_src>
import numpy as np
import jax
import jax.numpy as jnp
from jax.experimental import pallas as pl
from jax.experimental.pallas import tpu as pltpu


def ron_conv2d(x_nchw, weight_oihw, bias, *, compute_dtype=jnp.float32):
    """Conv2d(5x5, stride 1, pad 2) -> ReLU -> MaxPool2d(2x2) on NCHW input.

    `compute_dtype` sets the precision of the streamed input tensor (the only
    large HBM operand).  The im2col panel and the GEMM accumulate in float32
    regardless, so bf16 only quantizes the input copies.
    """
    N, Cin, H, W = x_nchw.shape
    Cout, _, KH, KW = weight_oihw.shape
    ph, pw = KH // 2, KW // 2                  # conv padding (2, 2)
    Ho, Wo = H // 2, W // 2                    # MaxPool2d(2,2), floor like torch
    Hq, Wq = Ho + 2, Wo + 2                    # polyphase grid incl. conv halo
    S0 = Hq * Wq                               # flattened polyphase image length
    C0 = Ho * Wq                               # panel cols per tap actually used
    C = pl.cdiv(C0, 128) * 128                 # 128-aligned per-tap column block
    Sflat = S0 + 2                             # covers the furthest static slice
    K = Cin * KH * KW                          # real contraction length
    Kp = max(128, pl.cdiv(K, 128) * 128)       # VMEM-only K padding (never DMA'd)

    # ---- glue: zero-pad + polyphase split + flatten (pure layout, ~1x bytes) --
    # Padded height/width 2*Hq / 2*Wq covers the conv halo of 2 plus the
    # row/col dropped by floor pooling when H or W is odd.
    xp = jnp.pad(x_nchw.astype(compute_dtype),
                 ((0, 0), (0, 0), (ph, 2 * Hq - H - ph), (pw, 2 * Wq - W - pw)))
    # (N,Cin,2Hq,2Wq) -> (N,2,2,Cin,Hq,Wq): xpoly[n,p,q,ci,r,c] = xp[n,ci,2r+p,2c+q]
    xpoly = xp.reshape(N, Cin, Hq, 2, Wq, 2).transpose(0, 3, 5, 1, 2, 4)
    # Merge (p,q,ci) into sublanes, flatten (r,c) into lanes, pad lanes by 2 so
    # the largest static window slice stays in bounds.
    xflat = xpoly.reshape(N, 4 * Cin, S0)
    xflat = jnp.pad(xflat, ((0, 0), (0, 0), (0, Sflat - S0)))

    # Weight as (Cout, Kp) with K ordered (kh, kw, ci) to match the panel rows;
    # the K padding columns are zero and multiply zeroed panel rows.
    wmat = weight_oihw.transpose(0, 2, 3, 1).reshape(Cout, K).astype(jnp.float32)
    wmat = jnp.pad(wmat, ((0, 0), (0, Kp - K)))
    b2 = bias.reshape(Cout, 1).astype(jnp.float32)

    taps = tuple((dh, dw) for dh in (0, 1) for dw in (0, 1))

    # ---- kernel ---------------------------------------------------------------
    def kernel(w_ref, b_ref, x_ref, o_ref, panel_ref):
        # Zero the panel so the K-padding rows and the 128-alignment padding
        # columns contribute exactly 0 (done every step -> megacore safe).
        panel_ref[...] = jnp.zeros_like(panel_ref)

        # Build the im2col panel from 100 static shifted slices:
        #   panel[(kh*KW+kw)*Cin + ci, t*C + i*Wq + j]
        #     = xflat[(p*2+q)*Cin + ci, (i+oh)*Wq + (j+ow)]
        # with p=(dh+kh)%2, oh=(dh+kh)//2 (same for q/ow), tap t=(dh,dw).
        for kh in range(KH):
            for kw in range(KW):
                row = (kh * KW + kw) * Cin
                for t, (dh, dw) in enumerate(taps):
                    a, b = dh + kh, dw + kw
                    src = ((a % 2) * 2 + (b % 2)) * Cin
                    s = (a // 2) * Wq + (b // 2)
                    panel_ref[pl.ds(row, Cin), pl.ds(t * C, C0)] = (
                        x_ref[0, pl.ds(src, Cin), pl.ds(s, C0)]
                        .astype(jnp.float32))

        # One wide-K MXU matmul covering all 4 pool taps at once.
        res = jnp.dot(w_ref[...], panel_ref[...],
                      preferred_element_type=jnp.float32)        # (Cout, 4*C)

        # MaxPool2d(2,2): VPU max over the 4 vreg-aligned tap slices.
        pooled = jnp.maximum(
            jnp.maximum(res[:, 0 * C:1 * C], res[:, 1 * C:2 * C]),
            jnp.maximum(res[:, 2 * C:3 * C], res[:, 3 * C:4 * C]))

        # Bias + ReLU commute with the max (monotone / per-channel constant).
        o_ref[0] = jnp.maximum(pooled + b_ref[...], 0.0).astype(o_ref.dtype)

    out = pl.pallas_call(
        kernel,
        out_shape=jax.ShapeDtypeStruct((N, Cout, C), jnp.float32),
        grid_spec=pltpu.PrefetchScalarGridSpec(
            num_scalar_prefetch=0,
            grid=(N,),                                    # >=2 parallel steps (v7x)
            in_specs=[
                pl.BlockSpec((Cout, Kp), lambda n: (0, 0)),             # weights
                pl.BlockSpec((Cout, 1), lambda n: (0, 0)),              # bias
                pl.BlockSpec((1, 4 * Cin, Sflat), lambda n: (n, 0, 0)),  # poly tile
            ],
            out_specs=pl.BlockSpec((1, Cout, C), lambda n: (n, 0, 0)),
            scratch_shapes=[pltpu.VMEM((Kp, 4 * C), jnp.float32)],      # im2col panel
        ),
        compiler_params=pltpu.CompilerParams(
            dimension_semantics=("parallel",)),
    )(wmat, b2, xflat)

    # ---- glue: drop the per-row halo / alignment padding, already NCHW --------
    out = out[:, :, :C0].reshape(N, Cout, Ho, Wq)[:, :, :, :Wo]
    return out


def init_params(key, input_ch, output_ch, kh=5, kw=5):
    """Deterministic init mimicking PyTorch Conv2d default (uniform +-1/sqrt(fan_in))."""
    fan_in = input_ch * kh * kw
    bound = 1.0 / np.sqrt(fan_in)
    k_w, k_b = jax.random.split(key)
    weight = jax.random.uniform(k_w, (output_ch, input_ch, kh, kw),
                                jnp.float32, -bound, bound)
    bias = jax.random.uniform(k_b, (output_ch,), jnp.float32, -bound, bound)
    return weight, bias


def ref_forward(x_nchw, weight_oihw, bias):
    """Pure-JAX reference: conv(5x5, pad 2) + bias + ReLU + maxpool(2x2), NCHW."""
    y = jax.lax.conv_general_dilated(
        x_nchw, weight_oihw, window_strides=(1, 1), padding=((2, 2), (2, 2)),
        dimension_numbers=("NCHW", "OIHW", "NCHW"))
    y = y + bias[None, :, None, None]
    y = jnp.maximum(y, 0.0)
    y = jax.lax.reduce_window(y, -jnp.inf, jax.lax.max,
                              (1, 1, 2, 2), (1, 1, 2, 2), "VALID")
    return y


if __name__ == "__main__":
    key = jax.random.PRNGKey(0)
    kx, kp = jax.random.split(key)
    N, Cin, Cout, H, W = 2, 4, 8, 16, 16

    x = jax.random.normal(kx, (N, Cin, H, W), jnp.float32)
    weight, bias = init_params(kp, Cin, Cout)

    ref = jax.block_until_ready(ref_forward(x, weight, bias))

    # f32 path (near-exact vs the f32 reference)
    out = jax.block_until_ready(ron_conv2d(x, weight, bias))
    assert out.shape == (N, Cout, H // 2, W // 2), out.shape
    np.testing.assert_allclose(np.asarray(out), np.asarray(ref),
                               rtol=2e-4, atol=2e-4)

    # bf16-input path: only the streamed input is quantized to bf16 (halved HBM
    # traffic); GEMM still accumulates in f32, so tolerance reflects input
    # quantization only.
    out_bf16 = jax.block_until_ready(
        ron_conv2d(x, weight, bias, compute_dtype=jnp.bfloat16))
    np.testing.assert_allclose(np.asarray(out_bf16), np.asarray(ref),
                               rtol=2e-2, atol=2e-2)

    print("KERNEL_OK")
</pallas_src>

<mosaic_0001>
module attributes {stable_mosaic.version = 11 : i64} {
  func.func @kernel(%arg0: i32, %arg1: memref<8x128xf32, #tpu.memory_space<vmem>>, %arg2: memref<8x1xf32, #tpu.memory_space<vmem>>, %arg3: memref<1x16x102xf32, #tpu.memory_space<vmem>>, %arg4: memref<1x8x128xf32, #tpu.memory_space<vmem>>, %arg5: memref<128x512xf32, #tpu.memory_space<vmem>>) attributes {dimension_semantics = [#tpu.dimension_semantics<parallel>], iteration_bounds = array<i64: 2>, scalar_prefetch = 0 : i64, scratch_operands = 1 : i64, tpu.core_type = #tpu.core_type<tc>, window_params = [{pipeline_mode = #tpu.pipeline_mode<synchronous>, transform_indices = @transform_0, window_bounds = array<i64: 8, 128>}, {pipeline_mode = #tpu.pipeline_mode<synchronous>, transform_indices = @transform_1, window_bounds = array<i64: 8, 1>}, {transform_indices = @transform_2, window_bounds = array<i64: 1, 16, 102>}, {transform_indices = @transform_3, window_bounds = array<i64: 1, 8, 128>}]} {
    %cst = arith.constant 0.000000e+00 : f32
    %0 = vector.broadcast %cst : f32 to vector<128x512xf32>
    %c0 = arith.constant 0 : index
    %c0_0 = arith.constant 0 : index
    %1 = vector.load %arg5[%c0, %c0_0] : memref<128x512xf32, #tpu.memory_space<vmem>>, vector<128x512xf32>
    tpu.vector_store %arg5[%c0, %c0_0], %0 {strides = array<i32>} : memref<128x512xf32, #tpu.memory_space<vmem>>, vector<128x512xf32>,
    %c0_1 = arith.constant 0 : index
    %c0_2 = arith.constant 0 : index
    %c0_3 = arith.constant 0 : index
    %2 = vector.load %arg3[%c0_1, %c0_2, %c0_3] : memref<1x16x102xf32, #tpu.memory_space<vmem>>, vector<1x4x80xf32>
    %3 = vector.shape_cast %2 : vector<1x4x80xf32> to vector<4x80xf32>
    %c0_4 = arith.constant 0 : index
    %c0_5 = arith.constant 0 : index
    %4 = vector.load %arg5[%c0_4, %c0_5] : memref<128x512xf32, #tpu.memory_space<vmem>>, vector<4x80xf32>
    tpu.vector_store %arg5[%c0_4, %c0_5], %3 {strides = array<i32>} : memref<128x512xf32, #tpu.memory_space<vmem>>, vector<4x80xf32>,
    %c0_6 = arith.constant 0 : index
    %c4 = arith.constant 4 : index
    %c0_7 = arith.constant 0 : index
    %5 = vector.load %arg3[%c0_6, %c4, %c0_7] : memref<1x16x102xf32, #tpu.memory_space<vmem>>, vector<1x4x80xf32>
    %6 = vector.shape_cast %5 : vector<1x4x80xf32> to vector<4x80xf32>
    %c0_8 = arith.constant 0 : index
    %c128 = arith.constant 128 : index
    %7 = vector.load %arg5[%c0_8, %c128] : memref<128x512xf32, #tpu.memory_space<vmem>>, vector<4x80xf32>
    tpu.vector_store %arg5[%c0_8, %c128], %6 {strides = array<i32>} : memref<128x512xf32, #tpu.memory_space<vmem>>, vector<4x80xf32>,
    %c0_9 = arith.constant 0 : index
    %c8 = arith.constant 8 : index
    %c0_10 = arith.constant 0 : index
    %8 = vector.load %arg3[%c0_9, %c8, %c0_10] : memref<1x16x102xf32, #tpu.memory_space<vmem>>, vector<1x4x80xf32>
    %9 = vector.shape_cast %8 : vector<1x4x80xf32> to vector<4x80xf32>
    %c0_11 = arith.constant 0 : index
    %c256 = arith.constant 256 : index
    %10 = vector.load %arg5[%c0_11, %c256] : memref<128x512xf32, #tpu.memory_space<vmem>>, vector<4x80xf32>
    tpu.vector_store %arg5[%c0_11, %c256], %9 {strides = array<i32>} : memref<128x512xf32, #tpu.memory_space<vmem>>, vector<4x80xf32>,
    %c0_12 = arith.constant 0 : index
    %c12 = arith.constant 12 : index
    %c0_13 = arith.constant 0 : index
    %11 = vector.load %arg3[%c0_12, %c12, %c0_13] : memref<1x16x102xf32, #tpu.memory_space<vmem>>, vector<1x4x80xf32>
    %12 = vector.shape_cast %11 : vector<1x4x80xf32> to vector<4x80xf32>
    %c0_14 = arith.constant 0 : index
    %c384 = arith.constant 384 : index
    %13 = vector.load %arg5[%c0_14, %c384] : memref<128x512xf32, #tpu.memory_space<vmem>>, vector<4x80xf32>
    tpu.vector_store %arg5[%c0_14, %c384], %12 {strides = array<i32>} : memref<128x512xf32, #tpu.memory_space<vmem>>, vector<4x80xf32>,
    %c0_15 = arith.constant 0 : index
    %c4_16 = arith.constant 4 : index
    %c0_17 = arith.constant 0 : index
    %14 = vector.load %arg3[%c0_15, %c4_16, %c0_17] : memref<1x16x102xf32, #tpu.memory_space<vmem>>, vector<1x4x80xf32>
    %15 = vector.shape_cast %14 : vector<1x4x80xf32> to vector<4x80xf32>
    %c4_18 = arith.constant 4 : index
    %c0_19 = arith.constant 0 : index
    %16 = vector.load %arg5[%c4_18, %c0_19] : memref<128x512xf32, #tpu.memory_space<vmem>>, vector<4x80xf32>
    tpu.vector_store %arg5[%c4_18, %c0_19], %15 {strides = array<i32>} : memref<128x512xf32, #tpu.memory_space<vmem>>, vector<4x80xf32>,
    %c0_20 = arith.constant 0 : index
    %c0_21 = arith.constant 0 : index
    %c1 = arith.constant 1 : index
    %17 = vector.load %arg3[%c0_20, %c0_21, %c1] : memref<1x16x102xf32, #tpu.memory_space<vmem>>, vector<1x4x80xf32>
    %18 = vector.shape_cast %17 : vector<1x4x80xf32> to vector<4x80xf32>
    %c4_22 = arith.constant 4 : index
    %c128_23 = arith.constant 128 : index
    %19 = vector.load %arg5[%c4_22, %c128_23] : memref<128x512xf32, #tpu.memory_space<vmem>>, vector<4x80xf32>
    tpu.vector_store %arg5[%c4_22, %c128_23], %18 {strides = array<i32>} : memref<128x512xf32, #tpu.memory_space<vmem>>, vector<4x80xf32>,
    %c0_24 = arith.constant 0 : index
    %c12_25 = arith.constant 12 : index
    %c0_26 = arith.constant 0 : index
    %20 = vector.load %arg3[%c0_24, %c12_25, %c0_26] : memref<1x16x102xf32, #tpu.memory_space<vmem>>, vector<1x4x80xf32>
    %21 = vector.shape_cast %20 : vector<1x4x80xf32> to vector<4x80xf32>
    %c4_27 = arith.constant 4 : index
    %c256_28 = arith.constant 256 : index
    %22 = vector.load %arg5[%c4_27, %c256_28] : memref<128x512xf32, #tpu.memory_space<vmem>>, vector<4x80xf32>
    tpu.vector_store %arg5[%c4_27, %c256_28], %21 {strides = array<i32>} : memref<128x512xf32, #tpu.memory_space<vmem>>, vector<4x80xf32>,
    %c0_29 = arith.constant 0 : index
    %c8_30 = arith.constant 8 : index
    %c1_31 = arith.constant 1 : index
    %23 = vector.load %arg3[%c0_29, %c8_30, %c1_31] : memref<1x16x102xf32, #tpu.memory_space<vmem>>, vector<1x4x80xf32>
    %24 = vector.shape_cast %23 : vector<1x4x80xf32> to vector<4x80xf32>
    %c4_32 = arith.constant 4 : index
    %c384_33 = arith.constant 384 : index
    %25 = vector.load %arg5[%c4_32, %c384_33] : memref<128x512xf32, #tpu.memory_space<vmem>>, vector<4x80xf32>
    tpu.vector_store %arg5[%c4_32, %c384_33], %24 {strides = array<i32>} : memref<128x512xf32, #tpu.memory_space<vmem>>, vector<4x80xf32>,
    %c0_34 = arith.constant 0 : index
    %c0_35 = arith.constant 0 : index
    %c1_36 = arith.constant 1 : index
    %26 = vector.load %arg3[%c0_34, %c0_35, %c1_36] : memref<1x16x102xf32, #tpu.memory_space<vmem>>, vector<1x4x80xf32>
    %27 = vector.shape_cast %26 : vector<1x4x80xf32> to vector<4x80xf32>
    %c8_37 = arith.constant 8 : index
    %c0_38 = arith.constant 0 : index
    %28 = vector.load %arg5[%c8_37, %c0_38] : memref<128x512xf32, #tpu.memory_space<vmem>>, vector<4x80xf32>
    tpu.vector_store %arg5[%c8_37, %c0_38], %27 {strides = array<i32>} : memref<128x512xf32, #tpu.memory_space<vmem>>, vector<4x80xf32>,
    %c0_39 = arith.constant 0 : index
    %c4_40 = arith.constant 4 : index
    %c1_41 = arith.constant 1 : index
    %29 = vector.load %arg3[%c0_39, %c4_40, %c1_41] : memref<1x16x102xf32, #tpu.memory_space<vmem>>, vector<1x4x80xf32>
    %30 = vector.shape_cast %29 : vector<1x4x80xf32> to vector<4x80xf32>
    %c8_42 = arith.constant 8 : index
    %c128_43 = arith.constant 128 : index
    %31 = vector.load %arg5[%c8_42, %c128_43] : memref<128x512xf32, #tpu.memory_space<vmem>>, vector<4x80xf32>
    tpu.vector_store %arg5[%c8_42, %c128_43], %30 {strides = array<i32>} : memref<128x512xf32, #tpu.memory_space<vmem>>, vector<4x80xf32>,
    %c0_44 = arith.constant 0 : index
    %c8_45 = arith.constant 8 : index
    %c1_46 = arith.constant 1 : index
    %32 = vector.load %arg3[%c0_44, %c8_45, %c1_46] : memref<1x16x102xf32, #tpu.memory_space<vmem>>, vector<1x4x80xf32>
    %33 = vector.shape_cast %32 : vector<1x4x80xf32> to vector<4x80xf32>
    %c8_47 = arith.constant 8 : index
    %c256_48 = arith.constant 256 : index
    %34 = vector.load %arg5[%c8_47, %c256_48] : memref<128x512xf32, #tpu.memory_space<vmem>>, vector<4x80xf32>
    tpu.vector_store %arg5[%c8_47, %c256_48], %33 {strides = array<i32>} : memref<128x512xf32, #tpu.memory_space<vmem>>, vector<4x80xf32>,
    %c0_49 = arith.constant 0 : index
    %c12_50 = arith.constant 12 : index
    %c1_51 = arith.constant 1 : index
    %35 = vector.load %arg3[%c0_49, %c12_50, %c1_51] : memref<1x16x102xf32, #tpu.memory_space<vmem>>, vector<1x4x80xf32>
    %36 = vector.shape_cast %35 : vector<1x4x80xf32> to vector<4x80xf32>
    %c8_52 = arith.constant 8 : index
    %c384_53 = arith.constant 384 : index
    %37 = vector.load %arg5[%c8_52, %c384_53] : memref<128x512xf32, #tpu.memory_space<vmem>>, vector<4x80xf32>
    tpu.vector_store %arg5[%c8_52, %c384_53], %36 {strides = array<i32>} : memref<128x512xf32, #tpu.memory_space<vmem>>, vector<4x80xf32>,
    %c0_54 = arith.constant 0 : index
    %c4_55 = arith.constant 4 : index
    %c1_56 = arith.constant 1 : index
    %38 = vector.load %arg3[%c0_54, %c4_55, %c1_56] : memref<1x16x102xf32, #tpu.memory_space<vmem>>, vector<1x4x80xf32>
    %39 = vector.shape_cast %38 : vector<1x4x80xf32> to vector<4x80xf32>
    %c12_57 = arith.constant 12 : index
    %c0_58 = arith.constant 0 : index
    %40 = vector.load %arg5[%c12_57, %c0_58] : memref<128x512xf32, #tpu.memory_space<vmem>>, vector<4x80xf32>
    tpu.vector_store %arg5[%c12_57, %c0_58], %39 {strides = array<i32>} : memref<128x512xf32, #tpu.memory_space<vmem>>, vector<4x80xf32>,
    %c0_59 = arith.constant 0 : index
    %c0_60 = arith.constant 0 : index
    %c2 = arith.constant 2 : index
    %41 = vector.load %arg3[%c0_59, %c0_60, %c2] : memref<1x16x102xf32, #tpu.memory_space<vmem>>, vector<1x4x80xf32>
    %42 = vector.shape_cast %41 : vector<1x4x80xf32> to vector<4x80xf32>
    %c12_61 = arith.constant 12 : index
    %c128_62 = arith.constant 128 : index
    %43 = vector.load %arg5[%c12_61, %c128_62] : memref<128x512xf32, #tpu.memory_space<vmem>>, vector<4x80xf32>
    tpu.vector_store %arg5[%c12_61, %c128_62], %42 {strides = array<i32>} : memref<128x512xf32, #tpu.memory_space<vmem>>, vector<4x80xf32>,
    %c0_63 = arith.constant 0 : index
    %c12_64 = arith.constant 12 : index
    %c1_65 = arith.constant 1 : index
    %44 = vector.load %arg3[%c0_63, %c12_64, %c1_65] : memref<1x16x102xf32, #tpu.memory_space<vmem>>, vector<1x4x80xf32>
    %45 = vector.shape_cast %44 : vector<1x4x80xf32> to vector<4x80xf32>
    %c12_66 = arith.constant 12 : index
    %c256_67 = arith.constant 256 : index
    %46 = vector.load %arg5[%c12_66, %c256_67] : memref<128x512xf32, #tpu.memory_space<vmem>>, vector<4x80xf32>
    tpu.vector_store %arg5[%c12_66, %c256_67], %45 {strides = array<i32>} : memref<128x512xf32, #tpu.memory_space<vmem>>, vector<4x80xf32>,
    %c0_68 = arith.constant 0 : index
    %c8_69 = arith.constant 8 : index
    %c2_70 = arith.constant 2 : index
    %47 = vector.load %arg3[%c0_68, %c8_69, %c2_70] : memref<1x16x102xf32, #tpu.memory_space<vmem>>, vector<1x4x80xf32>
    %48 = vector.shape_cast %47 : vector<1x4x80xf32> to vector<4x80xf32>
    %c12_71 = arith.constant 12 : index
    %c384_72 = arith.constant 384 : index
    %49 = vector.load %arg5[%c12_71, %c384_72] : memref<128x512xf32, #tpu.memory_space<vmem>>, vector<4x80xf32>
    tpu.vector_store %arg5[%c12_71, %c384_72], %48 {strides = array<i32>} : memref<128x512xf32, #tpu.memory_space<vmem>>, vector<4x80xf32>,
    %c0_73 = arith.constant 0 : index
    %c0_74 = arith.constant 0 : index
    %c2_75 = arith.constant 2 : index
    %50 = vector.load %arg3[%c0_73, %c0_74, %c2_75] : memref<1x16x102xf32, #tpu.memory_space<vmem>>, vector<1x4x80xf32>
    %51 = vector.shape_cast %50 : vector<1x4x80xf32> to vector<4x80xf32>
    %c16 = arith.constant 16 : index
    %c0_76 = arith.constant 0 : index
    %52 = vector.load %arg5[%c16, %c0_76] : memref<128x512xf32, #tpu.memory_space<vmem>>, vector<4x80xf32>
    tpu.vector_store %arg5[%c16, %c0_76], %51 {strides = array<i32>} : memref<128x512xf32, #tpu.memory_space<vmem>>, vector<4x80xf32>,
    %c0_77 = arith.constant 0 : index
    %c4_78 = arith.constant 4 : index
    %c2_79 = arith.constant 2 : index
    %53 = vector.load %arg3[%c0_77, %c4_78, %c2_79] : memref<1x16x102xf32, #tpu.memory_space<vmem>>, vector<1x4x80xf32>
    %54 = vector.shape_cast %53 : vector<1x4x80xf32> to vector<4x80xf32>
    %c16_80 = arith.constant 16 : index
    %c128_81 = arith.constant 128 : index
    %55 = vector.load %arg5[%c16_80, %c128_81] : memref<128x512xf32, #tpu.memory_space<vmem>>, vector<4x80xf32>
    tpu.vector_store %arg5[%c16_80, %c128_81], %54 {strides = array<i32>} : memref<128x512xf32, #tpu.memory_space<vmem>>, vector<4x80xf32>,
    %c0_82 = arith.constant 0 : index
    %c8_83 = arith.constant 8 : index
    %c2_84 = arith.constant 2 : index
    %56 = vector.load %arg3[%c0_82, %c8_83, %c2_84] : memref<1x16x102xf32, #tpu.memory_space<vmem>>, vector<1x4x80xf32>
    %57 = vector.shape_cast %56 : vector<1x4x80xf32> to vector<4x80xf32>
    %c16_85 = arith.constant 16 : index
    %c256_86 = arith.constant 256 : index
    %58 = vector.load %arg5[%c16_85, %c256_86] : memref<128x512xf32, #tpu.memory_space<vmem>>, vector<4x80xf32>
    tpu.vector_store %arg5[%c16_85, %c256_86], %57 {strides = array<i32>} : memref<128x512xf32, #tpu.memory_space<vmem>>, vector<4x80xf32>,
    %c0_87 = arith.constant 0 : index
    %c12_88 = arith.constant 12 : index
    %c2_89 = arith.constant 2 : index
    %59 = vector.load %arg3[%c0_87, %c12_88, %c2_89] : memref<1x16x102xf32, #tpu.memory_space<vmem>>, vector<1x4x80xf32>
    %60 = vector.shape_cast %59 : vector<1x4x80xf32> to vector<4x80xf32>
    %c16_90 = arith.constant 16 : index
    %c384_91 = arith.constant 384 : index
    %61 = vector.load %arg5[%c16_90, %c384_91] : memref<128x512xf32, #tpu.memory_space<vmem>>, vector<4x80xf32>
    tpu.vector_store %arg5[%c16_90, %c384_91], %60 {strides = array<i32>} : memref<128x512xf32, #tpu.memory_space<vmem>>, vector<4x80xf32>,
    %c0_92 = arith.constant 0 : index
    %c8_93 = arith.constant 8 : index
    %c0_94 = arith.constant 0 : index
    %62 = vector.load %arg3[%c0_92, %c8_93, %c0_94] : memref<1x16x102xf32, #tpu.memory_space<vmem>>, vector<1x4x80xf32>
    %63 = vector.shape_cast %62 : vector<1x4x80xf32> to vector<4x80xf32>
    %c20 = arith.constant 20 : index
    %c0_95 = arith.constant 0 : index
    %64 = vector.load %arg5[%c20, %c0_95] : memref<128x512xf32, #tpu.memory_space<vmem>>, vector<4x80xf32>
    tpu.vector_store %arg5[%c20, %c0_95], %63 {strides = array<i32>} : memref<128x512xf32, #tpu.memory_space<vmem>>, vector<4x80xf32>,
    %c0_96 = arith.constant 0 : index
    %c12_97 = arith.constant 12 : index
    %c0_98 = arith.constant 0 : index
    %65 = vector.load %arg3[%c0_96, %c12_97, %c0_98] : memref<1x16x102xf32, #tpu.memory_space<vmem>>, vector<1x4x80xf32>
    %66 = vector.shape_cast %65 : vector<1x4x80xf32> to vector<4x80xf32>
    %c20_99 = arith.constant 20 : index
    %c128_100 = arith.constant 128 : index
    %67 = vector.load %arg5[%c20_99, %c128_100] : memref<128x512xf32, #tpu.memory_space<vmem>>, vector<4x80xf32>
    tpu.vector_store %arg5[%c20_99, %c128_100], %66 {strides = array<i32>} : memref<128x512xf32, #tpu.memory_space<vmem>>, vector<4x80xf32>,
    %c0_101 = arith.constant 0 : index
    %c0_102 = arith.constant 0 : index
    %c10 = arith.constant 10 : index
    %68 = vector.load %arg3[%c0_101, %c0_102, %c10] : memref<1x16x102xf32, #tpu.memory_space<vmem>>, vector<1x4x80xf32>
    %69 = vector.shape_cast %68 : vector<1x4x80xf32> to vector<4x80xf32>
    %c20_103 = arith.constant 20 : index
    %c256_104 = arith.constant 256 : index
    %70 = vector.load %arg5[%c20_103, %c256_104] : memref<128x512xf32, #tpu.memory_space<vmem>>, vector<4x80xf32>
    tpu.vector_store %arg5[%c20_103, %c256_104], %69 {strides = array<i32>} : memref<128x512xf32, #tpu.memory_space<vmem>>, vector<4x80xf32>,
    %c0_105 = arith.constant 0 : index
    %c4_106 = arith.constant 4 : index
    %c10_107 = arith.constant 10 : index
    %71 = vector.load %arg3[%c0_105, %c4_106, %c10_107] : memref<1x16x102xf32, #tpu.memory_space<vmem>>, vector<1x4x80xf32>
    %72 = vector.shape_cast %71 : vector<1x4x80xf32> to vector<4x80xf32>
    %c20_108 = arith.constant 20 : index
    %c384_109 = arith.constant 384 : index
    %73 = vector.load %arg5[%c20_108, %c384_109] : memref<128x512xf32, #tpu.memory_space<vmem>>, vector<4x80xf32>
    tpu.vector_store %arg5[%c20_108, %c384_109], %72 {strides = array<i32>} : memref<128x512xf32, #tpu.memory_space<vmem>>, vector<4x80xf32>,
    %c0_110 = arith.constant 0 : index
    %c12_111 = arith.constant 12 : index
    %c0_112 = arith.constant 0 : index
    %74 = vector.load %arg3[%c0_110, %c12_111, %c0_112] : memref<1x16x102xf32, #tpu.memory_space<vmem>>, vector<1x4x80xf32>
    %75 = vector.shape_cast %74 : vector<1x4x80xf32> to vector<4x80xf32>
    %c24 = arith.constant 24 : index
    %c0_113 = arith.constant 0 : index
    %76 = vector.load %arg5[%c24, %c0_113] : memref<128x512xf32, #tpu.memory_space<vmem>>, vector<4x80xf32>
    tpu.vector_store %arg5[%c24, %c0_113], %75 {strides = array<i32>} : memref<128x512xf32, #tpu.memory_space<vmem>>, vector<4x80xf32>,
    %c0_114 = arith.constant 0 : index
    %c8_115 = arith.constant 8 : index
    %c1_116 = arith.constant 1 : index
    %77 = vector.load %arg3[%c0_114, %c8_115, %c1_116] : memref<1x16x102xf32, #tpu.memory_space<vmem>>, vector<1x4x80xf32>
    %78 = vector.shape_cast %77 : vector<1x4x80xf32> to vector<4x80xf32>
    %c24_117 = arith.constant 24 : index
    %c128_118 = arith.constant 128 : index
    %79 = vector.load %arg5[%c24_117, %c128_118] : memref<128x512xf32, #tpu.memory_space<vmem>>, vector<4x80xf32>
    tpu.vector_store %arg5[%c24_117, %c128_118], %78 {strides = array<i32>} : memref<128x512xf32, #tpu.memory_space<vmem>>, vector<4x80xf32>,
    %c0_119 = arith.constant 0 : index
    %c4_120 = arith.constant 4 : index
    %c10_121 = arith.constant 10 : index
    %80 = vector.load %arg3[%c0_119, %c4_120, %c10_121] : memref<1x16x102xf32, #tpu.memory_space<vmem>>, vector<1x4x80xf32>
    %81 = vector.shape_cast %80 : vector<1x4x80xf32> to vector<4x80xf32>
    %c24_122 = arith.constant 24 : index
    %c256_123 = arith.constant 256 : index
    %82 = vector.load %arg5[%c24_122, %c256_123] : memref<128x512xf32, #tpu.memory_space<vmem>>, vector<4x80xf32>
    tpu.vector_store %arg5[%c24_122, %c256_123], %81 {strides = array<i32>} : memref<128x512xf32, #tpu.memory_space<vmem>>, vector<4x80xf32>,
    %c0_124 = arith.constant 0 : index
    %c0_125 = arith.constant 0 : index
    %c11 = arith.constant 11 : index
    %83 = vector.load %arg3[%c0_124, %c0_125, %c11] : memref<1x16x102xf32, #tpu.memory_space<vmem>>, vector<1x4x80xf32>
    %84 = vector.shape_cast %83 : vector<1x4x80xf32> to vector<4x80xf32>
    %c24_126 = arith.constant 24 : index
    %c384_127 = arith.constant 384 : index
    %85 = vector.load %arg5[%c24_126, %c384_127] : memref<128x512xf32, #tpu.memory_space<vmem>>, vector<4x80xf32>
    tpu.vector_store %arg5[%c24_126, %c384_127], %84 {strides = array<i32>} : memref<128x512xf32, #tpu.memory_space<vmem>>, vector<4x80xf32>,
    %c0_128 = arith.constant 0 : index
    %c8_129 = arith.constant 8 : index
    %c1_130 = arith.constant 1 : index
    %86 = vector.load %arg3[%c0_128, %c8_129, %c1_130] : memref<1x16x102xf32, #tpu.memory_space<vmem>>, vector<1x4x80xf32>
    %87 = vector.shape_cast %86 : vector<1x4x80xf32> to vector<4x80xf32>
    %c28 = arith.constant 28 : index
    %c0_131 = arith.constant 0 : index
    %88 = vector.load %arg5[%c28, %c0_131] : memref<128x512xf32, #tpu.memory_space<vmem>>, vector<4x80xf32>
    tpu.vector_store %arg5[%c28, %c0_131], %87 {strides = array<i32>} : memref<128x512xf32, #tpu.memory_space<vmem>>, vector<4x80xf32>,
    %c0_132 = arith.constant 0 : index
    %c12_133 = arith.constant 12 : index
    %c1_134 = arith.constant 1 : index
    %89 = vector.load %arg3[%c0_132, %c12_133, %c1_134] : memref<1x16x102xf32, #tpu.memory_space<vmem>>, vector<1x4x80xf32>
    %90 = vector.shape_cast %89 : vector<1x4x80xf32> to vector<4x80xf32>
    %c28_135 = arith.constant 28 : index
    %c128_136 = arith.constant 128 : index
    %91 = vector.load %arg5[%c28_135, %c128_136] : memref<128x512xf32, #tpu.memory_space<vmem>>, vector<4x80xf32>
    tpu.vector_store %arg5[%c28_135, %c128_136], %90 {strides = array<i32>} : memref<128x512xf32, #tpu.memory_space<vmem>>, vector<4x80xf32>,
    %c0_137 = arith.constant 0 : index
    %c0_138 = arith.constant 0 : index
    %c11_139 = arith.constant 11 : index
    %92 = vector.load %arg3[%c0_137, %c0_138, %c11_139] : memref<1x16x102xf32, #tpu.memory_space<vmem>>, vector<1x4x80xf32>
    %93 = vector.shape_cast %92 : vector<1x4x80xf32> to vector<4x80xf32>
    %c28_140 = arith.constant 28 : index
    %c256_141 = arith.constant 256 : index
    %94 = vector.load %arg5[%c28_140, %c256_141] : memref<128x512xf32, #tpu.memory_space<vmem>>, vector<4x80xf32>
    tpu.vector_store %arg5[%c28_140, %c256_141], %93 {strides = array<i32>} : memref<128x512xf32, #tpu.memory_space<vmem>>, vector<4x80xf32>,
    %c0_142 = arith.constant 0 : index
    %c4_143 = arith.constant 4 : index
    %c11_144 = arith.constant 11 : index
    %95 = vector.load %arg3[%c0_142, %c4_143, %c11_144] : memref<1x16x102xf32, #tpu.memory_space<vmem>>, vector<1x4x80xf32>
    %96 = vector.shape_cast %95 : vector<1x4x80xf32> to vector<4x80xf32>
    %c28_145 = arith.constant 28 : index
    %c384_146 = arith.constant 384 : index
    %97 = vector.load %arg5[%c28_145, %c384_146] : memref<128x512xf32, #tpu.memory_space<vmem>>, vector<4x80xf32>
    tpu.vector_store %arg5[%c28_145, %c384_146], %96 {strides = array<i32>} : memref<128x512xf32, #tpu.memory_space<vmem>>, vector<4x80xf32>,
    %c0_147 = arith.constant 0 : index
    %c12_148 = arith.constant 12 : index
    %c1_149 = arith.constant 1 : index
    %98 = vector.load %arg3[%c0_147, %c12_148, %c1_149] : memref<1x16x102xf32, #tpu.memory_space<vmem>>, vector<1x4x80xf32>
    %99 = vector.shape_cast %98 : vector<1x4x80xf32> to vector<4x80xf32>
    %c32 = arith.constant 32 : index
    %c0_150 = arith.constant 0 : index
    %100 = vector.load %arg5[%c32, %c0_150] : memref<128x512xf32, #tpu.memory_space<vmem>>, vector<4x80xf32>
    tpu.vector_store %arg5[%c32, %c0_150], %99 {strides = array<i32>} : memref<128x512xf32, #tpu.memory_space<vmem>>, vector<4x80xf32>,
    %c0_151 = arith.constant 0 : index
    %c8_152 = arith.constant 8 : index
    %c2_153 = arith.constant 2 : index
    %101 = vector.load %arg3[%c0_151, %c8_152, %c2_153] : memref<1x16x102xf32, #tpu.memory_space<vmem>>, vector<1x4x80xf32>
    %102 = vector.shape_cast %101 : vector<1x4x80xf32> to vector<4x80xf32>
    %c32_154 = arith.constant 32 : index
    %c128_155 = arith.constant 128 : index
    %103 = vector.load %arg5[%c32_154, %c128_155] : memref<128x512xf32, #tpu.memory_space<vmem>>, vector<4x80xf32>
    tpu.vector_store %arg5[%c32_154, %c128_155], %102 {strides = array<i32>} : memref<128x512xf32, #tpu.memory_space<vmem>>, vector<4x80xf32>,
    %c0_156 = arith.constant 0 : index
    %c4_157 = arith.constant 4 : index
    %c11_158 = arith.constant 11 : index
    %104 = vector.load %arg3[%c0_156, %c4_157, %c11_158] : memref<1x16x102xf32, #tpu.memory_space<vmem>>, vector<1x4x80xf32>
    %105 = vector.shape_cast %104 : vector<1x4x80xf32> to vector<4x80xf32>
    %c32_159 = arith.constant 32 : index
    %c256_160 = arith.constant 256 : index
    %106 = vector.load %arg5[%c32_159, %c256_160] : memref<128x512xf32, #tpu.memory_space<vmem>>, vector<4x80xf32>
    tpu.vector_store %arg5[%c32_159, %c256_160], %105 {strides = array<i32>} : memref<128x512xf32, #tpu.memory_space<vmem>>, vector<4x80xf32>,
    %c0_161 = arith.constant 0 : index
    %c0_162 = arith.constant 0 : index
    %c12_163 = arith.constant 12 : index
    %107 = vector.load %arg3[%c0_161, %c0_162, %c12_163] : memref<1x16x102xf32, #tpu.memory_space<vmem>>, vector<1x4x80xf32>
    %108 = vector.shape_cast %107 : vector<1x4x80xf32> to vector<4x80xf32>
    %c32_164 = arith.constant 32 : index
    %c384_165 = arith.constant 384 : index
    %109 = vector.load %arg5[%c32_164, %c384_165] : memref<128x512xf32, #tpu.memory_space<vmem>>, vector<4x80xf32>
    tpu.vector_store %arg5[%c32_164, %c384_165], %108 {strides = array<i32>} : memref<128x512xf32, #tpu.memory_space<vmem>>, vector<4x80xf32>,
    %c0_166 = arith.constant 0 : index
    %c8_167 = arith.constant 8 : index
    %c2_168 = arith.constant 2 : index
    %110 = vector.load %arg3[%c0_166, %c8_167, %c2_168] : memref<1x16x102xf32, #tpu.memory_space<vmem>>, vector<1x4x80xf32>
    %111 = vector.shape_cast %110 : vector<1x4x80xf32> to vector<4x80xf32>
    %c36 = arith.constant 36 : index
    %c0_169 = arith.constant 0 : index
    %112 = vector.load %arg5[%c36, %c0_169] : memref<128x512xf32, #tpu.memory_space<vmem>>, vector<4x80xf32>
    tpu.vector_store %arg5[%c36, %c0_169], %111 {strides = array<i32>} : memref<128x512xf32, #tpu.memory_space<vmem>>, vector<4x80xf32>,
    %c0_170 = arith.constant 0 : index
    %c12_171 = arith.constant 12 : index
    %c2_172 = arith.constant 2 : index
    %113 = vector.load %arg3[%c0_170, %c12_171, %c2_172] : memref<1x16x102xf32, #tpu.memory_space<vmem>>, vector<1x4x80xf32>
    %114 = vector.shape_cast %113 : vector<1x4x80xf32> to vector<4x80xf32>
    %c36_173 = arith.constant 36 : index
    %c128_174 = arith.constant 128 : index
    %115 = vector.load %arg5[%c36_173, %c128_174] : memref<128x512xf32, #tpu.memory_space<vmem>>, vector<4x80xf32>
    tpu.vector_store %arg5[%c36_173, %c128_174], %114 {strides = array<i32>} : memref<128x512xf32, #tpu.memory_space<vmem>>, vector<4x80xf32>,
    %c0_175 = arith.constant 0 : index
    %c0_176 = arith.constant 0 : index
    %c12_177 = arith.constant 12 : index
    %116 = vector.load %arg3[%c0_175, %c0_176, %c12_177] : memref<1x16x102xf32, #tpu.memory_space<vmem>>, vector<1x4x80xf32>
    %117 = vector.shape_cast %116 : vector<1x4x80xf32> to vector<4x80xf32>
    %c36_178 = arith.constant 36 : index
    %c256_179 = arith.constant 256 : index
    %118 = vector.load %arg5[%c36_178, %c256_179] : memref<128x512xf32, #tpu.memory_space<vmem>>, vector<4x80xf32>
    tpu.vector_store %arg5[%c36_178, %c256_179], %117 {strides = array<i32>} : memref<128x512xf32, #tpu.memory_space<vmem>>, vector<4x80xf32>,
    %c0_180 = arith.constant 0 : index
    %c4_181 = arith.constant 4 : index
    %c12_182 = arith.constant 12 : index
    %119 = vector.load %arg3[%c0_180, %c4_181, %c12_182] : memref<1x16x102xf32, #tpu.memory_space<vmem>>, vector<1x4x80xf32>
    %120 = vector.shape_cast %119 : vector<1x4x80xf32> to vector<4x80xf32>
    %c36_183 = arith.constant 36 : index
    %c384_184 = arith.constant 384 : index
    %121 = vector.load %arg5[%c36_183, %c384_184] : memref<128x512xf32, #tpu.memory_space<vmem>>, vector<4x80xf32>
    tpu.vector_store %arg5[%c36_183, %c384_184], %120 {strides = array<i32>} : memref<128x512xf32, #tpu.memory_space<vmem>>, vector<4x80xf32>,
    %c0_185 = arith.constant 0 : index
    %c0_186 = arith.constant 0 : index
    %c10_187 = arith.constant 10 : index
    %122 = vector.load %arg3[%c0_185, %c0_186, %c10_187] : memref<1x16x102xf32, #tpu.memory_space<vmem>>, vector<1x4x80xf32>
    %123 = vector.shape_cast %122 : vector<1x4x80xf32> to vector<4x80xf32>
    %c40 = arith.constant 40 : index
    %c0_188 = arith.constant 0 : index
    %124 = vector.load %arg5[%c40, %c0_188] : memref<128x512xf32, #tpu.memory_space<vmem>>, vector<4x80xf32>
    tpu.vector_store %arg5[%c40, %c0_188], %123 {strides = array<i32>} : memref<128x512xf32, #tpu.memory_space<vmem>>, vector<4x80xf32>,
    %c0_189 = arith.constant 0 : index
    %c4_190 = arith.constant 4 : index
    %c10_191 = arith.constant 10 : index
    %125 = vector.load %arg3[%c0_189, %c4_190, %c10_191] : memref<1x16x102xf32, #tpu.memory_space<vmem>>, vector<1x4x80xf32>
    %126 = vector.shape_cast %125 : vector<1x4x80xf32> to vector<4x80xf32>
    %c40_192 = arith.constant 40 : index
    %c128_193 = arith.constant 128 : index
    %127 = vector.load %arg5[%c40_192, %c128_193] : memref<128x512xf32, #tpu.memory_space<vmem>>, vector<4x80xf32>
    tpu.vector_store %arg5[%c40_192, %c128_193], %126 {strides = array<i32>} : memref<128x512xf32, #tpu.memory_space<vmem>>, vector<4x80xf32>,
    %c0_194 = arith.constant 0 : index
    %c8_195 = arith.constant 8 : index
    %c10_196 = arith.constant 10 : index
    %128 = vector.load %arg3[%c0_194, %c8_195, %c10_196] : memref<1x16x102xf32, #tpu.memory_space<vmem>>, vector<1x4x80xf32>
    %129 = vector.shape_cast %128 : vector<1x4x80xf32> to vector<4x80xf32>
    %c40_197 = arith.constant 40 : index
    %c256_198 = arith.constant 256 : index
    %130 = vector.load %arg5[%c40_197, %c256_198] : memref<128x512xf32, #tpu.memory_space<vmem>>, vector<4x80xf32>
    tpu.vector_store %arg5[%c40_197, %c256_198], %129 {strides = array<i32>} : memref<128x512xf32, #tpu.memory_space<vmem>>, vector<4x80xf32>,
    %c0_199 = arith.constant 0 : index
    %c12_200 = arith.constant 12 : index
    %c10_201 = arith.constant 10 : index
    %131 = vector.load %arg3[%c0_199, %c12_200, %c10_201] : memref<1x16x102xf32, #tpu.memory_space<vmem>>, vector<1x4x80xf32>
    %132 = vector.shape_cast %131 : vector<1x4x80xf32> to vector<4x80xf32>
    %c40_202 = arith.constant 40 : index
    %c384_203 = arith.constant 384 : index
    %133 = vector.load %arg5[%c40_202, %c384_203] : memref<128x512xf32, #tpu.memory_space<vmem>>, vector<4x80xf32>
    tpu.vector_store %arg5[%c40_202, %c384_203], %132 {strides = array<i32>} : memref<128x512xf32, #tpu.memory_space<vmem>>, vector<4x80xf32>,
    %c0_204 = arith.constant 0 : index
    %c4_205 = arith.constant 4 : index
    %c10_206 = arith.constant 10 : index
    %134 = vector.load %arg3[%c0_204, %c4_205, %c10_206] : memref<1x16x102xf32, #tpu.memory_space<vmem>>, vector<1x4x80xf32>
    %135 = vector.shape_cast %134 : vector<1x4x80xf32> to vector<4x80xf32>
    %c44 = arith.constant 44 : index
    %c0_207 = arith.constant 0 : index
    %136 = vector.load %arg5[%c44, %c0_207] : memref<128x512xf32, #tpu.memory_space<vmem>>, vector<4x80xf32>
    tpu.vector_store %arg5[%c44, %c0_207], %135 {strides = array<i32>} : memref<128x512xf32, #tpu.memory_space<vmem>>, vector<4x80xf32>,
    %c0_208 = arith.constant 0 : index
    %c0_209 = arith.constant 0 : index
    %c11_210 = arith.constant 11 : index
    %137 = vector.load %arg3[%c0_208, %c0_209, %c11_210] : memref<1x16x102xf32, #tpu.memory_space<vmem>>, vector<1x4x80xf32>
    %138 = vector.shape_cast %137 : vector<1x4x80xf32> to vector<4x80xf32>
    %c44_211 = arith.constant 44 : index
    %c128_212 = arith.constant 128 : index
    %139 = vector.load %arg5[%c44_211, %c128_212] : memref<128x512xf32, #tpu.memory_space<vmem>>, vector<4x80xf32>
    tpu.vector_store %arg5[%c44_211, %c128_212], %138 {strides = array<i32>} : memref<128x512xf32, #tpu.memory_space<vmem>>, vector<4x80xf32>,
    %c0_213 = arith.constant 0 : index
    %c12_214 = arith.constant 12 : index
    %c10_215 = arith.constant 10 : index
    %140 = vector.load %arg3[%c0_213, %c12_214, %c10_215] : memref<1x16x102xf32, #tpu.memory_space<vmem>>, vector<1x4x80xf32>
    %141 = vector.shape_cast %140 : vector<1x4x80xf32> to vector<4x80xf32>
    %c44_216 = arith.constant 44 : index
    %c256_217 = arith.constant 256 : index
    %142 = vector.load %arg5[%c44_216, %c256_217] : memref<128x512xf32, #tpu.memory_space<vmem>>, vector<4x80xf32>
    tpu.vector_store %arg5[%c44_216, %c256_217], %141 {strides = array<i32>} : memref<128x512xf32, #tpu.memory_space<vmem>>, vector<4x80xf32>,
    %c0_218 = arith.constant 0 : index
    %c8_219 = arith.constant 8 : index
    %c11_220 = arith.constant 11 : index
    %143 = vector.load %arg3[%c0_218, %c8_219, %c11_220] : memref<1x16x102xf32, #tpu.memory_space<vmem>>, vector<1x4x80xf32>
    %144 = vector.shape_cast %143 : vector<1x4x80xf32> to vector<4x80xf32>
    %c44_221 = arith.constant 44 : index
    %c384_222 = arith.constant 384 : index
    %145 = vector.load %arg5[%c44_221, %c384_222] : memref<128x512xf32, #tpu.memory_space<vmem>>, vector<4x80xf32>
    tpu.vector_store %arg5[%c44_221, %c384_222], %144 {strides = array<i32>} : memref<128x512xf32, #tpu.memory_space<vmem>>, vector<4x80xf32>,
    %c0_223 = arith.constant 0 : index
    %c0_224 = arith.constant 0 : index
    %c11_225 = arith.constant 11 : index
    %146 = vector.load %arg3[%c0_223, %c0_224, %c11_225] : memref<1x16x102xf32, #tpu.memory_space<vmem>>, vector<1x4x80xf32>
    %147 = vector.shape_cast %146 : vector<1x4x80xf32> to vector<4x80xf32>
    %c48 = arith.constant 48 : index
    %c0_226 = arith.constant 0 : index
    %148 = vector.load %arg5[%c48, %c0_226] : memref<128x512xf32, #tpu.memory_space<vmem>>, vector<4x80xf32>
    tpu.vector_store %arg5[%c48, %c0_226], %147 {strides = array<i32>} : memref<128x512xf32, #tpu.memory_space<vmem>>, vector<4x80xf32>,
    %c0_227 = arith.constant 0 : index
    %c4_228 = arith.constant 4 : index
    %c11_229 = arith.constant 11 : index
    %149 = vector.load %arg3[%c0_227, %c4_228, %c11_229] : memref<1x16x102xf32, #tpu.memory_space<vmem>>, vector<1x4x80xf32>
    %150 = vector.shape_cast %149 : vector<1x4x80xf32> to vector<4x80xf32>
    %c48_230 = arith.constant 48 : index
    %c128_231 = arith.constant 128 : index
    %151 = vector.load %arg5[%c48_230, %c128_231] : memref<128x512xf32, #tpu.memory_space<vmem>>, vector<4x80xf32>
    tpu.vector_store %arg5[%c48_230, %c128_231], %150 {strides = array<i32>} : memref<128x512xf32, #tpu.memory_space<vmem>>, vector<4x80xf32>,
    %c0_232 = arith.constant 0 : index
    %c8_233 = arith.constant 8 : index
    %c11_234 = arith.constant 11 : index
    %152 = vector.load %arg3[%c0_232, %c8_233, %c11_234] : memref<1x16x102xf32, #tpu.memory_space<vmem>>, vector<1x4x80xf32>
    %153 = vector.shape_cast %152 : vector<1x4x80xf32> to vector<4x80xf32>
    %c48_235 = arith.constant 48 : index
    %c256_236 = arith.constant 256 : index
    %154 = vector.load %arg5[%c48_235, %c256_236] : memref<128x512xf32, #tpu.memory_space<vmem>>, vector<4x80xf32>
    tpu.vector_store %arg5[%c48_235, %c256_236], %153 {strides = array<i32>} : memref<128x512xf32, #tpu.memory_space<vmem>>, vector<4x80xf32>,
    %c0_237 = arith.constant 0 : index
    %c12_238 = arith.constant 12 : index
    %c11_239 = arith.constant 11 : index
    %155 = vector.load %arg3[%c0_237, %c12_238, %c11_239] : memref<1x16x102xf32, #tpu.memory_space<vmem>>, vector<1x4x80xf32>
    %156 = vector.shape_cast %155 : vector<1x4x80xf32> to vector<4x80xf32>
    %c48_240 = arith.constant 48 : index
    %c384_241 = arith.constant 384 : index
    %157 = vector.load %arg5[%c48_240, %c384_241] : memref<128x512xf32, #tpu.memory_space<vmem>>, vector<4x80xf32>
    tpu.vector_store %arg5[%c48_240, %c384_241], %156 {strides = array<i32>} : memref<128x512xf32, #tpu.memory_space<vmem>>, vector<4x80xf32>,
    %c0_242 = arith.constant 0 : index
    %c4_243 = arith.constant 4 : index
    %c11_244 = arith.constant 11 : index
    %158 = vector.load %arg3[%c0_242, %c4_243, %c11_244] : memref<1x16x102xf32, #tpu.memory_space<vmem>>, vector<1x4x80xf32>
    %159 = vector.shape_cast %158 : vector<1x4x80xf32> to vector<4x80xf32>
    %c52 = arith.constant 52 : index
    %c0_245 = arith.constant 0 : index
    %160 = vector.load %arg5[%c52, %c0_245] : memref<128x512xf32, #tpu.memory_space<vmem>>, vector<4x80xf32>
    tpu.vector_store %arg5[%c52, %c0_245], %159 {strides = array<i32>} : memref<128x512xf32, #tpu.memory_space<vmem>>, vector<4x80xf32>,
    %c0_246 = arith.constant 0 : index
    %c0_247 = arith.constant 0 : index
    %c12_248 = arith.constant 12 : index
    %161 = vector.load %arg3[%c0_246, %c0_247, %c12_248] : memref<1x16x102xf32, #tpu.memory_space<vmem>>, vector<1x4x80xf32>
    %162 = vector.shape_cast %161 : vector<1x4x80xf32> to vector<4x80xf32>
    %c52_249 = arith.constant 52 : index
    %c128_250 = arith.constant 128 : index
    %163 = vector.load %arg5[%c52_249, %c128_250] : memref<128x512xf32, #tpu.memory_space<vmem>>, vector<4x80xf32>
    tpu.vector_store %arg5[%c52_249, %c128_250], %162 {strides = array<i32>} : memref<128x512xf32, #tpu.memory_space<vmem>>, vector<4x80xf32>,
    %c0_251 = arith.constant 0 : index
    %c12_252 = arith.constant 12 : index
    %c11_253 = arith.constant 11 : index
    %164 = vector.load %arg3[%c0_251, %c12_252, %c11_253] : memref<1x16x102xf32, #tpu.memory_space<vmem>>, vector<1x4x80xf32>
    %165 = vector.shape_cast %164 : vector<1x4x80xf32> to vector<4x80xf32>
    %c52_254 = arith.constant 52 : index
    %c256_255 = arith.constant 256 : index
    %166 = vector.load %arg5[%c52_254, %c256_255] : memref<128x512xf32, #tpu.memory_space<vmem>>, vector<4x80xf32>
    tpu.vector_store %arg5[%c52_254, %c256_255], %165 {strides = array<i32>} : memref<128x512xf32, #tpu.memory_space<vmem>>, vector<4x80xf32>,
    %c0_256 = arith.constant 0 : index
    %c8_257 = arith.constant 8 : index
    %c12_258 = arith.constant 12 : index
    %167 = vector.load %arg3[%c0_256, %c8_257, %c12_258] : memref<1x16x102xf32, #tpu.memory_space<vmem>>, vector<1x4x80xf32>
    %168 = vector.shape_cast %167 : vector<1x4x80xf32> to vector<4x80xf32>
    %c52_259 = arith.constant 52 : index
    %c384_260 = arith.constant 384 : index
    %169 = vector.load %arg5[%c52_259, %c384_260] : memref<128x512xf32, #tpu.memory_space<vmem>>, vector<4x80xf32>
    tpu.vector_store %arg5[%c52_259, %c384_260], %168 {strides = array<i32>} : memref<128x512xf32, #tpu.memory_space<vmem>>, vector<4x80xf32>,
    %c0_261 = arith.constant 0 : index
    %c0_262 = arith.constant 0 : index
    %c12_263 = arith.constant 12 : index
    %170 = vector.load %arg3[%c0_261, %c0_262, %c12_263] : memref<1x16x102xf32, #tpu.memory_space<vmem>>, vector<1x4x80xf32>
    %171 = vector.shape_cast %170 : vector<1x4x80xf32> to vector<4x80xf32>
    %c56 = arith.constant 56 : index
    %c0_264 = arith.constant 0 : index
    %172 = vector.load %arg5[%c56, %c0_264] : memref<128x512xf32, #tpu.memory_space<vmem>>, vector<4x80xf32>
    tpu.vector_store %arg5[%c56, %c0_264], %171 {strides = array<i32>} : memref<128x512xf32, #tpu.memory_space<vmem>>, vector<4x80xf32>,
    %c0_265 = arith.constant 0 : index
    %c4_266 = arith.constant 4 : index
    %c12_267 = arith.constant 12 : index
    %173 = vector.load %arg3[%c0_265, %c4_266, %c12_267] : memref<1x16x102xf32, #tpu.memory_space<vmem>>, vector<1x4x80xf32>
    %174 = vector.shape_cast %173 : vector<1x4x80xf32> to vector<4x80xf32>
    %c56_268 = arith.constant 56 : index
    %c128_269 = arith.constant 128 : index
    %175 = vector.load %arg5[%c56_268, %c128_269] : memref<128x512xf32, #tpu.memory_space<vmem>>, vector<4x80xf32>
    tpu.vector_store %arg5[%c56_268, %c128_269], %174 {strides = array<i32>} : memref<128x512xf32, #tpu.memory_space<vmem>>, vector<4x80xf32>,
    %c0_270 = arith.constant 0 : index
    %c8_271 = arith.constant 8 : index
    %c12_272 = arith.constant 12 : index
    %176 = vector.load %arg3[%c0_270, %c8_271, %c12_272] : memref<1x16x102xf32, #tpu.memory_space<vmem>>, vector<1x4x80xf32>
    %177 = vector.shape_cast %176 : vector<1x4x80xf32> to vector<4x80xf32>
    %c56_273 = arith.constant 56 : index
    %c256_274 = arith.constant 256 : index
    %178 = vector.load %arg5[%c56_273, %c256_274] : memref<128x512xf32, #tpu.memory_space<vmem>>, vector<4x80xf32>
    tpu.vector_store %arg5[%c56_273, %c256_274], %177 {strides = array<i32>} : memref<128x512xf32, #tpu.memory_space<vmem>>, vector<4x80xf32>,
    %c0_275 = arith.constant 0 : index
    %c12_276 = arith.constant 12 : index
    %c12_277 = arith.constant 12 : index
    %179 = vector.load %arg3[%c0_275, %c12_276, %c12_277] : memref<1x16x102xf32, #tpu.memory_space<vmem>>, vector<1x4x80xf32>
    %180 = vector.shape_cast %179 : vector<1x4x80xf32> to vector<4x80xf32>
    %c56_278 = arith.constant 56 : index
    %c384_279 = arith.constant 384 : index
    %181 = vector.load %arg5[%c56_278, %c384_279] : memref<128x512xf32, #tpu.memory_space<vmem>>, vector<4x80xf32>
    tpu.vector_store %arg5[%c56_278, %c384_279], %180 {strides = array<i32>} : memref<128x512xf32, #tpu.memory_space<vmem>>, vector<4x80xf32>,
    %c0_280 = arith.constant 0 : index
    %c8_281 = arith.constant 8 : index
    %c10_282 = arith.constant 10 : index
    %182 = vector.load %arg3[%c0_280, %c8_281, %c10_282] : memref<1x16x102xf32, #tpu.memory_space<vmem>>, vector<1x4x80xf32>
    %183 = vector.shape_cast %182 : vector<1x4x80xf32> to vector<4x80xf32>
    %c60 = arith.constant 60 : index
    %c0_283 = arith.constant 0 : index
    %184 = vector.load %arg5[%c60, %c0_283] : memref<128x512xf32, #tpu.memory_space<vmem>>, vector<4x80xf32>
    tpu.vector_store %arg5[%c60, %c0_283], %183 {strides = array<i32>} : memref<128x512xf32, #tpu.memory_space<vmem>>, vector<4x80xf32>,
    %c0_284 = arith.constant 0 : index
    %c12_285 = arith.constant 12 : index
    %c10_286 = arith.constant 10 : index
    %185 = vector.load %arg3[%c0_284, %c12_285, %c10_286] : memref<1x16x102xf32, #tpu.memory_space<vmem>>, vector<1x4x80xf32>
    %186 = vector.shape_cast %185 : vector<1x4x80xf32> to vector<4x80xf32>
    %c60_287 = arith.constant 60 : index
    %c128_288 = arith.constant 128 : index
    %187 = vector.load %arg5[%c60_287, %c128_288] : memref<128x512xf32, #tpu.memory_space<vmem>>, vector<4x80xf32>
    tpu.vector_store %arg5[%c60_287, %c128_288], %186 {strides = array<i32>} : memref<128x512xf32, #tpu.memory_space<vmem>>, vector<4x80xf32>,
    %c0_289 = arith.constant 0 : index
    %c0_290 = arith.constant 0 : index
    %c20_291 = arith.constant 20 : index
    %188 = vector.load %arg3[%c0_289, %c0_290, %c20_291] : memref<1x16x102xf32, #tpu.memory_space<vmem>>, vector<1x4x80xf32>
    %189 = vector.shape_cast %188 : vector<1x4x80xf32> to vector<4x80xf32>
    %c60_292 = arith.constant 60 : index
    %c256_293 = arith.constant 256 : index
    %190 = vector.load %arg5[%c60_292, %c256_293] : memref<128x512xf32, #tpu.memory_space<vmem>>, vector<4x80xf32>
    tpu.vector_store %arg5[%c60_292, %c256_293], %189 {strides = array<i32>} : memref<128x512xf32, #tpu.memory_space<vmem>>, vector<4x80xf32>,
    %c0_294 = arith.constant 0 : index
    %c4_295 = arith.constant 4 : index
    %c20_296 = arith.constant 20 : index
    %191 = vector.load %arg3[%c0_294, %c4_295, %c20_296] : memref<1x16x102xf32, #tpu.memory_space<vmem>>, vector<1x4x80xf32>
    %192 = vector.shape_cast %191 : vector<1x4x80xf32> to vector<4x80xf32>
    %c60_297 = arith.constant 60 : index
    %c384_298 = arith.constant 384 : index
    %193 = vector.load %arg5[%c60_297, %c384_298] : memref<128x512xf32, #tpu.memory_space<vmem>>, vector<4x80xf32>
    tpu.vector_store %arg5[%c60_297, %c384_298], %192 {strides = array<i32>} : memref<128x512xf32, #tpu.memory_space<vmem>>, vector<4x80xf32>,
    %c0_299 = arith.constant 0 : index
    %c12_300 = arith.constant 12 : index
    %c10_301 = arith.constant 10 : index
    %194 = vector.load %arg3[%c0_299, %c12_300, %c10_301] : memref<1x16x102xf32, #tpu.memory_space<vmem>>, vector<1x4x80xf32>
    %195 = vector.shape_cast %194 : vector<1x4x80xf32> to vector<4x80xf32>
    %c64 = arith.constant 64 : index
    %c0_302 = arith.constant 0 : index
    %196 = vector.load %arg5[%c64, %c0_302] : memref<128x512xf32, #tpu.memory_space<vmem>>, vector<4x80xf32>
    tpu.vector_store %arg5[%c64, %c0_302], %195 {strides = array<i32>} : memref<128x512xf32, #tpu.memory_space<vmem>>, vector<4x80xf32>,
    %c0_303 = arith.constant 0 : index
    %c8_304 = arith.constant 8 : index
    %c11_305 = arith.constant 11 : index
    %197 = vector.load %arg3[%c0_303, %c8_304, %c11_305] : memref<1x16x102xf32, #tpu.memory_space<vmem>>, vector<1x4x80xf32>
    %198 = vector.shape_cast %197 : vector<1x4x80xf32> to vector<4x80xf32>
    %c64_306 = arith.constant 64 : index
    %c128_307 = arith.constant 128 : index
    %199 = vector.load %arg5[%c64_306, %c128_307] : memref<128x512xf32, #tpu.memory_space<vmem>>, vector<4x80xf32>
    tpu.vector_store %arg5[%c64_306, %c128_307], %198 {strides = array<i32>} : memref<128x512xf32, #tpu.memory_space<vmem>>, vector<4x80xf32>,
    %c0_308 = arith.constant 0 : index
    %c4_309 = arith.constant 4 : index
    %c20_310 = arith.constant 20 : index
    %200 = vector.load %arg3[%c0_308, %c4_309, %c20_310] : memref<1x16x102xf32, #tpu.memory_space<vmem>>, vector<1x4x80xf32>
    %201 = vector.shape_cast %200 : vector<1x4x80xf32> to vector<4x80xf32>
    %c64_311 = arith.constant 64 : index
    %c256_312 = arith.constant 256 : index
    %202 = vector.load %arg5[%c64_311, %c256_312] : memref<128x512xf32, #tpu.memory_space<vmem>>, vector<4x80xf32>
    tpu.vector_store %arg5[%c64_311, %c256_312], %201 {strides = array<i32>} : memref<128x512xf32, #tpu.memory_space<vmem>>, vector<4x80xf32>,
    %c0_313 = arith.constant 0 : index
    %c0_314 = arith.constant 0 : index
    %c21 = arith.constant 21 : index
    %203 = vector.load %arg3[%c0_313, %c0_314, %c21] : memref<1x16x102xf32, #tpu.memory_space<vmem>>, vector<1x4x80xf32>
    %204 = vector.shape_cast %203 : vector<1x4x80xf32> to vector<4x80xf32>
    %c64_315 = arith.constant 64 : index
    %c384_316 = arith.constant 384 : index
    %205 = vector.load %arg5[%c64_315, %c384_316] : memref<128x512xf32, #tpu.memory_space<vmem>>, vector<4x80xf32>
    tpu.vector_store %arg5[%c64_315, %c384_316], %204 {strides = array<i32>} : memref<128x512xf32, #tpu.memory_space<vmem>>, vector<4x80xf32>,
    %c0_317 = arith.constant 0 : index
    %c8_318 = arith.constant 8 : index
    %c11_319 = arith.constant 11 : index
    %206 = vector.load %arg3[%c0_317, %c8_318, %c11_319] : memref<1x16x102xf32, #tpu.memory_space<vmem>>, vector<1x4x80xf32>
    %207 = vector.shape_cast %206 : vector<1x4x80xf32> to vector<4x80xf32>
    %c68 = arith.constant 68 : index
    %c0_320 = arith.constant 0 : index
    %208 = vector.load %arg5[%c68, %c0_320] : memref<128x512xf32, #tpu.memory_space<vmem>>, vector<4x80xf32>
    tpu.vector_store %arg5[%c68, %c0_320], %207 {strides = array<i32>} : memref<128x512xf32, #tpu.memory_space<vmem>>, vector<4x80xf32>,
    %c0_321 = arith.constant 0 : index
    %c12_322 = arith.constant 12 : index
    %c11_323 = arith.constant 11 : index
    %209 = vector.load %arg3[%c0_321, %c12_322, %c11_323] : memref<1x16x102xf32, #tpu.memory_space<vmem>>, vector<1x4x80xf32>
    %210 = vector.shape_cast %209 : vector<1x4x80xf32> to vector<4x80xf32>
    %c68_324 = arith.constant 68 : index
    %c128_325 = arith.constant 128 : index
    %211 = vector.load %arg5[%c68_324, %c128_325] : memref<128x512xf32, #tpu.memory_space<vmem>>, vector<4x80xf32>
    tpu.vector_store %arg5[%c68_324, %c128_325], %210 {strides = array<i32>} : memref<128x512xf32, #tpu.memory_space<vmem>>, vector<4x80xf32>,
    %c0_326 = arith.constant 0 : index
    %c0_327 = arith.constant 0 : index
    %c21_328 = arith.constant 21 : index
    %212 = vector.load %arg3[%c0_326, %c0_327, %c21_328] : memref<1x16x102xf32, #tpu.memory_space<vmem>>, vector<1x4x80xf32>
    %213 = vector.shape_cast %212 : vector<1x4x80xf32> to vector<4x80xf32>
    %c68_329 = arith.constant 68 : index
    %c256_330 = arith.constant 256 : index
    %214 = vector.load %arg5[%c68_329, %c256_330] : memref<128x512xf32, #tpu.memory_space<vmem>>, vector<4x80xf32>
    tpu.vector_store %arg5[%c68_329, %c256_330], %213 {strides = array<i32>} : memref<128x512xf32, #tpu.memory_space<vmem>>, vector<4x80xf32>,
    %c0_331 = arith.constant 0 : index
    %c4_332 = arith.constant 4 : index
    %c21_333 = arith.constant 21 : index
    %215 = vector.load %arg3[%c0_331, %c4_332, %c21_333] : memref<1x16x102xf32, #tpu.memory_space<vmem>>, vector<1x4x80xf32>
    %216 = vector.shape_cast %215 : vector<1x4x80xf32> to vector<4x80xf32>
    %c68_334 = arith.constant 68 : index
    %c384_335 = arith.constant 384 : index
    %217 = vector.load %arg5[%c68_334, %c384_335] : memref<128x512xf32, #tpu.memory_space<vmem>>, vector<4x80xf32>
    tpu.vector_store %arg5[%c68_334, %c384_335], %216 {strides = array<i32>} : memref<128x512xf32, #tpu.memory_space<vmem>>, vector<4x80xf32>,
    %c0_336 = arith.constant 0 : index
    %c12_337 = arith.constant 12 : index
    %c11_338 = arith.constant 11 : index
    %218 = vector.load %arg3[%c0_336, %c12_337, %c11_338] : memref<1x16x102xf32, #tpu.memory_space<vmem>>, vector<1x4x80xf32>
    %219 = vector.shape_cast %218 : vector<1x4x80xf32> to vector<4x80xf32>
    %c72 = arith.constant 72 : index
    %c0_339 = arith.constant 0 : index
    %220 = vector.load %arg5[%c72, %c0_339] : memref<128x512xf32, #tpu.memory_space<vmem>>, vector<4x80xf32>
    tpu.vector_store %arg5[%c72, %c0_339], %219 {strides = array<i32>} : memref<128x512xf32, #tpu.memory_space<vmem>>, vector<4x80xf32>,
    %c0_340 = arith.constant 0 : index
    %c8_341 = arith.constant 8 : index
    %c12_342 = arith.constant 12 : index
    %221 = vector.load %arg3[%c0_340, %c8_341, %c12_342] : memref<1x16x102xf32, #tpu.memory_space<vmem>>, vector<1x4x80xf32>
    %222 = vector.shape_cast %221 : vector<1x4x80xf32> to vector<4x80xf32>
    %c72_343 = arith.constant 72 : index
    %c128_344 = arith.constant 128 : index
    %223 = vector.load %arg5[%c72_343, %c128_344] : memref<128x512xf32, #tpu.memory_space<vmem>>, vector<4x80xf32>
    tpu.vector_store %arg5[%c72_343, %c128_344], %222 {strides = array<i32>} : memref<128x512xf32, #tpu.memory_space<vmem>>, vector<4x80xf32>,
    %c0_345 = arith.constant 0 : index
    %c4_346 = arith.constant 4 : index
    %c21_347 = arith.constant 21 : index
    %224 = vector.load %arg3[%c0_345, %c4_346, %c21_347] : memref<1x16x102xf32, #tpu.memory_space<vmem>>, vector<1x4x80xf32>
    %225 = vector.shape_cast %224 : vector<1x4x80xf32> to vector<4x80xf32>
    %c72_348 = arith.constant 72 : index
    %c256_349 = arith.constant 256 : index
    %226 = vector.load %arg5[%c72_348, %c256_349] : memref<128x512xf32, #tpu.memory_space<vmem>>, vector<4x80xf32>
    tpu.vector_store %arg5[%c72_348, %c256_349], %225 {strides = array<i32>} : memref<128x512xf32, #tpu.memory_space<vmem>>, vector<4x80xf32>,
    %c0_350 = arith.constant 0 : index
    %c0_351 = arith.constant 0 : index
    %c22 = arith.constant 22 : index
    %227 = vector.load %arg3[%c0_350, %c0_351, %c22] : memref<1x16x102xf32, #tpu.memory_space<vmem>>, vector<1x4x80xf32>
    %228 = vector.shape_cast %227 : vector<1x4x80xf32> to vector<4x80xf32>
    %c72_352 = arith.constant 72 : index
    %c384_353 = arith.constant 384 : index
    %229 = vector.load %arg5[%c72_352, %c384_353] : memref<128x512xf32, #tpu.memory_space<vmem>>, vector<4x80xf32>
    tpu.vector_store %arg5[%c72_352, %c384_353], %228 {strides = array<i32>} : memref<128x512xf32, #tpu.memory_space<vmem>>, vector<4x80xf32>,
    %c0_354 = arith.constant 0 : index
    %c8_355 = arith.constant 8 : index
    %c12_356 = arith.constant 12 : index
    %230 = vector.load %arg3[%c0_354, %c8_355, %c12_356] : memref<1x16x102xf32, #tpu.memory_space<vmem>>, vector<1x4x80xf32>
    %231 = vector.shape_cast %230 : vector<1x4x80xf32> to vector<4x80xf32>
    %c76 = arith.constant 76 : index
    %c0_357 = arith.constant 0 : index
    %232 = vector.load %arg5[%c76, %c0_357] : memref<128x512xf32, #tpu.memory_space<vmem>>, vector<4x80xf32>
    tpu.vector_store %arg5[%c76, %c0_357], %231 {strides = array<i32>} : memref<128x512xf32, #tpu.memory_space<vmem>>, vector<4x80xf32>,
    %c0_358 = arith.constant 0 : index
    %c12_359 = arith.constant 12 : index
    %c12_360 = arith.constant 12 : index
    %233 = vector.load %arg3[%c0_358, %c12_359, %c12_360] : memref<1x16x102xf32, #tpu.memory_space<vmem>>, vector<1x4x80xf32>
    %234 = vector.shape_cast %233 : vector<1x4x80xf32> to vector<4x80xf32>
    %c76_361 = arith.constant 76 : index
    %c128_362 = arith.constant 128 : index
    %235 = vector.load %arg5[%c76_361, %c128_362] : memref<128x512xf32, #tpu.memory_space<vmem>>, vector<4x80xf32>
    tpu.vector_store %arg5[%c76_361, %c128_362], %234 {strides = array<i32>} : memref<128x512xf32, #tpu.memory_space<vmem>>, vector<4x80xf32>,
    %c0_363 = arith.constant 0 : index
    %c0_364 = arith.constant 0 : index
    %c22_365 = arith.constant 22 : index
    %236 = vector.load %arg3[%c0_363, %c0_364, %c22_365] : memref<1x16x102xf32, #tpu.memory_space<vmem>>, vector<1x4x80xf32>
    %237 = vector.shape_cast %236 : vector<1x4x80xf32> to vector<4x80xf32>
    %c76_366 = arith.constant 76 : index
    %c256_367 = arith.constant 256 : index
    %238 = vector.load %arg5[%c76_366, %c256_367] : memref<128x512xf32, #tpu.memory_space<vmem>>, vector<4x80xf32>
    tpu.vector_store %arg5[%c76_366, %c256_367], %237 {strides = array<i32>} : memref<128x512xf32, #tpu.memory_space<vmem>>, vector<4x80xf32>,
    %c0_368 = arith.constant 0 : index
    %c4_369 = arith.constant 4 : index
    %c22_370 = arith.constant 22 : index
    %239 = vector.load %arg3[%c0_368, %c4_369, %c22_370] : memref<1x16x102xf32, #tpu.memory_space<vmem>>, vector<1x4x80xf32>
    %240 = vector.shape_cast %239 : vector<1x4x80xf32> to vector<4x80xf32>
    %c76_371 = arith.constant 76 : index
    %c384_372 = arith.constant 384 : index
    %241 = vector.load %arg5[%c76_371, %c384_372] : memref<128x512xf32, #tpu.memory_space<vmem>>, vector<4x80xf32>
    tpu.vector_store %arg5[%c76_371, %c384_372], %240 {strides = array<i32>} : memref<128x512xf32, #tpu.memory_space<vmem>>, vector<4x80xf32>,
    %c0_373 = arith.constant 0 : index
    %c0_374 = arith.constant 0 : index
    %c20_375 = arith.constant 20 : index
    %242 = vector.load %arg3[%c0_373, %c0_374, %c20_375] : memref<1x16x102xf32, #tpu.memory_space<vmem>>, vector<1x4x80xf32>
    %243 = vector.shape_cast %242 : vector<1x4x80xf32> to vector<4x80xf32>
    %c80 = arith.constant 80 : index
    %c0_376 = arith.constant 0 : index
    %244 = vector.load %arg5[%c80, %c0_376] : memref<128x512xf32, #tpu.memory_space<vmem>>, vector<4x80xf32>
    tpu.vector_store %arg5[%c80, %c0_376], %243 {strides = array<i32>} : memref<128x512xf32, #tpu.memory_space<vmem>>, vector<4x80xf32>,
    %c0_377 = arith.constant 0 : index
    %c4_378 = arith.constant 4 : index
    %c20_379 = arith.constant 20 : index
    %245 = vector.load %arg3[%c0_377, %c4_378, %c20_379] : memref<1x16x102xf32, #tpu.memory_space<vmem>>, vector<1x4x80xf32>
    %246 = vector.shape_cast %245 : vector<1x4x80xf32> to vector<4x80xf32>
    %c80_380 = arith.constant 80 : index
    %c128_381 = arith.constant 128 : index
    %247 = vector.load %arg5[%c80_380, %c128_381] : memref<128x512xf32, #tpu.memory_space<vmem>>, vector<4x80xf32>
    tpu.vector_store %arg5[%c80_380, %c128_381], %246 {strides = array<i32>} : memref<128x512xf32, #tpu.memory_space<vmem>>, vector<4x80xf32>,
    %c0_382 = arith.constant 0 : index
    %c8_383 = arith.constant 8 : index
    %c20_384 = arith.constant 20 : index
    %248 = vector.load %arg3[%c0_382, %c8_383, %c20_384] : memref<1x16x102xf32, #tpu.memory_space<vmem>>, vector<1x4x80xf32>
    %249 = vector.shape_cast %248 : vector<1x4x80xf32> to vector<4x80xf32>
    %c80_385 = arith.constant 80 : index
    %c256_386 = arith.constant 256 : index
    %250 = vector.load %arg5[%c80_385, %c256_386] : memref<128x512xf32, #tpu.memory_space<vmem>>, vector<4x80xf32>
    tpu.vector_store %arg5[%c80_385, %c256_386], %249 {strides = array<i32>} : memref<128x512xf32, #tpu.memory_space<vmem>>, vector<4x80xf32>,
    %c0_387 = arith.constant 0 : index
    %c12_388 = arith.constant 12 : index
    %c20_389 = arith.constant 20 : index
    %251 = vector.load %arg3[%c0_387, %c12_388, %c20_389] : memref<1x16x102xf32, #tpu.memory_space<vmem>>, vector<1x4x80xf32>
    %252 = vector.shape_cast %251 : vector<1x4x80xf32> to vector<4x80xf32>
    %c80_390 = arith.constant 80 : index
    %c384_391 = arith.constant 384 : index
    %253 = vector.load %arg5[%c80_390, %c384_391] : memref<128x512xf32, #tpu.memory_space<vmem>>, vector<4x80xf32>
    tpu.vector_store %arg5[%c80_390, %c384_391], %252 {strides = array<i32>} : memref<128x512xf32, #tpu.memory_space<vmem>>, vector<4x80xf32>,
    %c0_392 = arith.constant 0 : index
    %c4_393 = arith.constant 4 : index
    %c20_394 = arith.constant 20 : index
    %254 = vector.load %arg3[%c0_392, %c4_393, %c20_394] : memref<1x16x102xf32, #tpu.memory_space<vmem>>, vector<1x4x80xf32>
    %255 = vector.shape_cast %254 : vector<1x4x80xf32> to vector<4x80xf32>
    %c84 = arith.constant 84 : index
    %c0_395 = arith.constant 0 : index
    %256 = vector.load %arg5[%c84, %c0_395] : memref<128x512xf32, #tpu.memory_space<vmem>>, vector<4x80xf32>
    tpu.vector_store %arg5[%c84, %c0_395], %255 {strides = array<i32>} : memref<128x512xf32, #tpu.memory_space<vmem>>, vector<4x80xf32>,
    %c0_396 = arith.constant 0 : index
    %c0_397 = arith.constant 0 : index
    %c21_398 = arith.constant 21 : index
    %257 = vector.load %arg3[%c0_396, %c0_397, %c21_398] : memref<1x16x102xf32, #tpu.memory_space<vmem>>, vector<1x4x80xf32>
    %258 = vector.shape_cast %257 : vector<1x4x80xf32> to vector<4x80xf32>
    %c84_399 = arith.constant 84 : index
    %c128_400 = arith.constant 128 : index
    %259 = vector.load %arg5[%c84_399, %c128_400] : memref<128x512xf32, #tpu.memory_space<vmem>>, vector<4x80xf32>
    tpu.vector_store %arg5[%c84_399, %c128_400], %258 {strides = array<i32>} : memref<128x512xf32, #tpu.memory_space<vmem>>, vector<4x80xf32>,
    %c0_401 = arith.constant 0 : index
    %c12_402 = arith.constant 12 : index
    %c20_403 = arith.constant 20 : index
    %260 = vector.load %arg3[%c0_401, %c12_402, %c20_403] : memref<1x16x102xf32, #tpu.memory_space<vmem>>, vector<1x4x80xf32>
    %261 = vector.shape_cast %260 : vector<1x4x80xf32> to vector<4x80xf32>
    %c84_404 = arith.constant 84 : index
    %c256_405 = arith.constant 256 : index
    %262 = vector.load %arg5[%c84_404, %c256_405] : memref<128x512xf32, #tpu.memory_space<vmem>>, vector<4x80xf32>
    tpu.vector_store %arg5[%c84_404, %c256_405], %261 {strides = array<i32>} : memref<128x512xf32, #tpu.memory_space<vmem>>, vector<4x80xf32>,
    %c0_406 = arith.constant 0 : index
    %c8_407 = arith.constant 8 : index
    %c21_408 = arith.constant 21 : index
    %263 = vector.load %arg3[%c0_406, %c8_407, %c21_408] : memref<1x16x102xf32, #tpu.memory_space<vmem>>, vector<1x4x80xf32>
    %264 = vector.shape_cast %263 : vector<1x4x80xf32> to vector<4x80xf32>
    %c84_409 = arith.constant 84 : index
    %c384_410 = arith.constant 384 : index
    %265 = vector.load %arg5[%c84_409, %c384_410] : memref<128x512xf32, #tpu.memory_space<vmem>>, vector<4x80xf32>
    tpu.vector_store %arg5[%c84_409, %c384_410], %264 {strides = array<i32>} : memref<128x512xf32, #tpu.memory_space<vmem>>, vector<4x80xf32>,
    %c0_411 = arith.constant 0 : index
    %c0_412 = arith.constant 0 : index
    %c21_413 = arith.constant 21 : index
    %266 = vector.load %arg3[%c0_411, %c0_412, %c21_413] : memref<1x16x102xf32, #tpu.memory_space<vmem>>, vector<1x4x80xf32>
    %267 = vector.shape_cast %266 : vector<1x4x80xf32> to vector<4x80xf32>
    %c88 = arith.constant 88 : index
    %c0_414 = arith.constant 0 : index
    %268 = vector.load %arg5[%c88, %c0_414] : memref<128x512xf32, #tpu.memory_space<vmem>>, vector<4x80xf32>
    tpu.vector_store %arg5[%c88, %c0_414], %267 {strides = array<i32>} : memref<128x512xf32, #tpu.memory_space<vmem>>, vector<4x80xf32>,
    %c0_415 = arith.constant 0 : index
    %c4_416 = arith.constant 4 : index
    %c21_417 = arith.constant 21 : index
    %269 = vector.load %arg3[%c0_415, %c4_416, %c21_417] : memref<1x16x102xf32, #tpu.memory_space<vmem>>, vector<1x4x80xf32>
    %270 = vector.shape_cast %269 : vector<1x4x80xf32> to vector<4x80xf32>
    %c88_418 = arith.constant 88 : index
    %c128_419 = arith.constant 128 : index
    %271 = vector.load %arg5[%c88_418, %c128_419] : memref<128x512xf32, #tpu.memory_space<vmem>>, vector<4x80xf32>
    tpu.vector_store %arg5[%c88_418, %c128_419], %270 {strides = array<i32>} : memref<128x512xf32, #tpu.memory_space<vmem>>, vector<4x80xf32>,
    %c0_420 = arith.constant 0 : index
    %c8_421 = arith.constant 8 : index
    %c21_422 = arith.constant 21 : index
    %272 = vector.load %arg3[%c0_420, %c8_421, %c21_422] : memref<1x16x102xf32, #tpu.memory_space<vmem>>, vector<1x4x80xf32>
    %273 = vector.shape_cast %272 : vector<1x4x80xf32> to vector<4x80xf32>
    %c88_423 = arith.constant 88 : index
    %c256_424 = arith.constant 256 : index
    %274 = vector.load %arg5[%c88_423, %c256_424] : memref<128x512xf32, #tpu.memory_space<vmem>>, vector<4x80xf32>
    tpu.vector_store %arg5[%c88_423, %c256_424], %273 {strides = array<i32>} : memref<128x512xf32, #tpu.memory_space<vmem>>, vector<4x80xf32>,
    %c0_425 = arith.constant 0 : index
    %c12_426 = arith.constant 12 : index
    %c21_427 = arith.constant 21 : index
    %275 = vector.load %arg3[%c0_425, %c12_426, %c21_427] : memref<1x16x102xf32, #tpu.memory_space<vmem>>, vector<1x4x80xf32>
    %276 = vector.shape_cast %275 : vector<1x4x80xf32> to vector<4x80xf32>
    %c88_428 = arith.constant 88 : index
    %c384_429 = arith.constant 384 : index
    %277 = vector.load %arg5[%c88_428, %c384_429] : memref<128x512xf32, #tpu.memory_space<vmem>>, vector<4x80xf32>
    tpu.vector_store %arg5[%c88_428, %c384_429], %276 {strides = array<i32>} : memref<128x512xf32, #tpu.memory_space<vmem>>, vector<4x80xf32>,
    %c0_430 = arith.constant 0 : index
    %c4_431 = arith.constant 4 : index
    %c21_432 = arith.constant 21 : index
    %278 = vector.load %arg3[%c0_430, %c4_431, %c21_432] : memref<1x16x102xf32, #tpu.memory_space<vmem>>, vector<1x4x80xf32>
    %279 = vector.shape_cast %278 : vector<1x4x80xf32> to vector<4x80xf32>
    %c92 = arith.constant 92 : index
    %c0_433 = arith.constant 0 : index
    %280 = vector.load %arg5[%c92, %c0_433] : memref<128x512xf32, #tpu.memory_space<vmem>>, vector<4x80xf32>
    tpu.vector_store %arg5[%c92, %c0_433], %279 {strides = array<i32>} : memref<128x512xf32, #tpu.memory_space<vmem>>, vector<4x80xf32>,
    %c0_434 = arith.constant 0 : index
    %c0_435 = arith.constant 0 : index
    %c22_436 = arith.constant 22 : index
    %281 = vector.load %arg3[%c0_434, %c0_435, %c22_436] : memref<1x16x102xf32, #tpu.memory_space<vmem>>, vector<1x4x80xf32>
    %282 = vector.shape_cast %281 : vector<1x4x80xf32> to vector<4x80xf32>
    %c92_437 = arith.constant 92 : index
    %c128_438 = arith.constant 128 : index
    %283 = vector.load %arg5[%c92_437, %c128_438] : memref<128x512xf32, #tpu.memory_space<vmem>>, vector<4x80xf32>
    tpu.vector_store %arg5[%c92_437, %c128_438], %282 {strides = array<i32>} : memref<128x512xf32, #tpu.memory_space<vmem>>, vector<4x80xf32>,
    %c0_439 = arith.constant 0 : index
    %c12_440 = arith.constant 12 : index
    %c21_441 = arith.constant 21 : index
    %284 = vector.load %arg3[%c0_439, %c12_440, %c21_441] : memref<1x16x102xf32, #tpu.memory_space<vmem>>, vector<1x4x80xf32>
    %285 = vector.shape_cast %284 : vector<1x4x80xf32> to vector<4x80xf32>
    %c92_442 = arith.constant 92 : index
    %c256_443 = arith.constant 256 : index
    %286 = vector.load %arg5[%c92_442, %c256_443] : memref<128x512xf32, #tpu.memory_space<vmem>>, vector<4x80xf32>
    tpu.vector_store %arg5[%c92_442, %c256_443], %285 {strides = array<i32>} : memref<128x512xf32, #tpu.memory_space<vmem>>, vector<4x80xf32>,
    %c0_444 = arith.constant 0 : index
    %c8_445 = arith.constant 8 : index
    %c22_446 = arith.constant 22 : index
    %287 = vector.load %arg3[%c0_444, %c8_445, %c22_446] : memref<1x16x102xf32, #tpu.memory_space<vmem>>, vector<1x4x80xf32>
    %288 = vector.shape_cast %287 : vector<1x4x80xf32> to vector<4x80xf32>
    %c92_447 = arith.constant 92 : index
    %c384_448 = arith.constant 384 : index
    %289 = vector.load %arg5[%c92_447, %c384_448] : memref<128x512xf32, #tpu.memory_space<vmem>>, vector<4x80xf32>
    tpu.vector_store %arg5[%c92_447, %c384_448], %288 {strides = array<i32>} : memref<128x512xf32, #tpu.memory_space<vmem>>, vector<4x80xf32>,
    %c0_449 = arith.constant 0 : index
    %c0_450 = arith.constant 0 : index
    %c22_451 = arith.constant 22 : index
    %290 = vector.load %arg3[%c0_449, %c0_450, %c22_451] : memref<1x16x102xf32, #tpu.memory_space<vmem>>, vector<1x4x80xf32>
    %291 = vector.shape_cast %290 : vector<1x4x80xf32> to vector<4x80xf32>
    %c96 = arith.constant 96 : index
    %c0_452 = arith.constant 0 : index
    %292 = vector.load %arg5[%c96, %c0_452] : memref<128x512xf32, #tpu.memory_space<vmem>>, vector<4x80xf32>
    tpu.vector_store %arg5[%c96, %c0_452], %291 {strides = array<i32>} : memref<128x512xf32, #tpu.memory_space<vmem>>, vector<4x80xf32>,
    %c0_453 = arith.constant 0 : index
    %c4_454 = arith.constant 4 : index
    %c22_455 = arith.constant 22 : index
    %293 = vector.load %arg3[%c0_453, %c4_454, %c22_455] : memref<1x16x102xf32, #tpu.memory_space<vmem>>, vector<1x4x80xf32>
    %294 = vector.shape_cast %293 : vector<1x4x80xf32> to vector<4x80xf32>
    %c96_456 = arith.constant 96 : index
    %c128_457 = arith.constant 128 : index
    %295 = vector.load %arg5[%c96_456, %c128_457] : memref<128x512xf32, #tpu.memory_space<vmem>>, vector<4x80xf32>
    tpu.vector_store %arg5[%c96_456, %c128_457], %294 {strides = array<i32>} : memref<128x512xf32, #tpu.memory_space<vmem>>, vector<4x80xf32>,
    %c0_458 = arith.constant 0 : index
    %c8_459 = arith.constant 8 : index
    %c22_460 = arith.constant 22 : index
    %296 = vector.load %arg3[%c0_458, %c8_459, %c22_460] : memref<1x16x102xf32, #tpu.memory_space<vmem>>, vector<1x4x80xf32>
    %297 = vector.shape_cast %296 : vector<1x4x80xf32> to vector<4x80xf32>
    %c96_461 = arith.constant 96 : index
    %c256_462 = arith.constant 256 : index
    %298 = vector.load %arg5[%c96_461, %c256_462] : memref<128x512xf32, #tpu.memory_space<vmem>>, vector<4x80xf32>
    tpu.vector_store %arg5[%c96_461, %c256_462], %297 {strides = array<i32>} : memref<128x512xf32, #tpu.memory_space<vmem>>, vector<4x80xf32>,
    %c0_463 = arith.constant 0 : index
    %c12_464 = arith.constant 12 : index
    %c22_465 = arith.constant 22 : index
    %299 = vector.load %arg3[%c0_463, %c12_464, %c22_465] : memref<1x16x102xf32, #tpu.memory_space<vmem>>, vector<1x4x80xf32>
    %300 = vector.shape_cast %299 : vector<1x4x80xf32> to vector<4x80xf32>
    %c96_466 = arith.constant 96 : index
    %c384_467 = arith.constant 384 : index
    %301 = vector.load %arg5[%c96_466, %c384_467] : memref<128x512xf32, #tpu.memory_space<vmem>>, vector<4x80xf32>
    tpu.vector_store %arg5[%c96_466, %c384_467], %300 {strides = array<i32>} : memref<128x512xf32, #tpu.memory_space<vmem>>, vector<4x80xf32>,
    %c0_468 = arith.constant 0 : index
    %c0_469 = arith.constant 0 : index
    %302 = vector.load %arg1[%c0_468, %c0_469] : memref<8x128xf32, #tpu.memory_space<vmem>>, vector<8x128xf32>
    %c0_470 = arith.constant 0 : index
    %c0_471 = arith.constant 0 : index
    %303 = vector.load %arg5[%c0_470, %c0_471] : memref<128x512xf32, #tpu.memory_space<vmem>>, vector<128x512xf32>
    %cst_472 = arith.constant dense<0.000000e+00> : vector<8x512xf32>
    %304 = tpu.matmul %302, %303, %cst_472 {dimension_numbers = #tpu.dot_dimension_numbers<[1], [0], [0], [1], [0, 0, 1, 1], [], []>} : vector<8x128xf32>, vector<128x512xf32>, vector<8x512xf32> -> vector<8x512xf32>
    %305 = vector.extract_strided_slice %304 {offsets = [0, 0], sizes = [8, 128], strides = [1, 1]} : vector<8x512xf32> to vector<8x128xf32>
    %306 = vector.extract_strided_slice %304 {offsets = [0, 128], sizes = [8, 128], strides = [1, 1]} : vector<8x512xf32> to vector<8x128xf32>
    %307 = arith.maximumf %305, %306 : vector<8x128xf32>
    %308 = vector.extract_strided_slice %304 {offsets = [0, 256], sizes = [8, 128], strides = [1, 1]} : vector<8x512xf32> to vector<8x128xf32>
    %309 = vector.extract_strided_slice %304 {offsets = [0, 384], sizes = [8, 128], strides = [1, 1]} : vector<8x512xf32> to vector<8x128xf32>
    %310 = arith.maximumf %308, %309 : vector<8x128xf32>
    %311 = arith.maximumf %307, %310 : vector<8x128xf32>
    %c0_473 = arith.constant 0 : index
    %c0_474 = arith.constant 0 : index
    %312 = vector.load %arg2[%c0_473, %c0_474] : memref<8x1xf32, #tpu.memory_space<vmem>>, vector<8x1xf32>
    %313 = vector.broadcast %312 : vector<8x1xf32> to vector<8x128xf32>
    %314 = arith.addf %311, %313 : vector<8x128xf32>
    %cst_475 = arith.constant 0.000000e+00 : f32
    %315 = vector.broadcast %cst_475 : f32 to vector<8x128xf32>
    %316 = arith.maximumf %314, %315 : vector<8x128xf32>
    %c0_476 = arith.constant 0 : index
    %c0_477 = arith.constant 0 : index
    %c0_478 = arith.constant 0 : index
    %317 = vector.load %arg4[%c0_476, %c0_477, %c0_478] : memref<1x8x128xf32, #tpu.memory_space<vmem>>, vector<1x8x128xf32>
    %318 = vector.shape_cast %317 : vector<1x8x128xf32> to vector<8x128xf32>
    %319 = vector.shape_cast %316 : vector<8x128xf32> to vector<1x8x128xf32>
    tpu.vector_store %arg4[%c0_476, %c0_477, %c0_478], %319 {strides = array<i32>} : memref<1x8x128xf32, #tpu.memory_space<vmem>>, vector<1x8x128xf32>,
    return
  }
  func.func @transform_0(%arg0: i32) -> (i32, i32) {
    %c0_i32 = arith.constant 0 : i32
    %c0_i32_0 = arith.constant 0 : i32
    %c0_i32_1 = arith.constant 0 : i32
    return %c0_i32, %c0_i32_0 : i32, i32
  }
  func.func @transform_1(%arg0: i32) -> (i32, i32) {
    %c0_i32 = arith.constant 0 : i32
    %c0_i32_0 = arith.constant 0 : i32
    %c0_i32_1 = arith.constant 0 : i32
    return %c0_i32, %c0_i32_0 : i32, i32
  }
  func.func @transform_2(%arg0: i32) -> (i32, i32, i32) {
    %c0_i32 = arith.constant 0 : i32
    %c0_i32_0 = arith.constant 0 : i32
    %c0_i32_1 = arith.constant 0 : i32
    return %arg0, %c0_i32, %c0_i32_0 : i32, i32, i32
  }
  func.func @transform_3(%arg0: i32) -> (i32, i32, i32) {
    %c0_i32 = arith.constant 0 : i32
    %c0_i32_0 = arith.constant 0 : i32
    %c0_i32_1 = arith.constant 0 : i32
    return %arg0, %c0_i32, %c0_i32_0 : i32, i32, i32
  }
}

</mosaic_0001>

<bundles_post_ra>
// kernel: tpu_custom_call.1
= control target key start
LH: loop header
LB: loop body
LE: loop exit
PB: predicated region body
PF: predicated region fallthrough
CT: control target
= control target key end

     0   :  { %8 = vsyncpa [#allocation4], 0  ;;  %s1909_s0 = inlined_call_operand.vmem [shape: f32[8,128], index: 0, kind: input, shape index: {}]   ;;  %s1910_s1 = inlined_call_operand.vmem [shape: f32[8,1], index: 1, kind: input, shape index: {}]   ;;  %s1911_s2 = inlined_call_operand.hbm [shape: f32[2,16,102], index: 2, kind: input, shape index: {}]   ;;  %s1912_s3 = inlined_call_operand.hbm [shape: f32[2,8,128], index: 3, kind: output, shape index: {}]  }
   0x1   :  { %10 = vsyncpa [#allocation4 + $0x1], 0 }
   0x2   :  { %11 = vsyncpa [#allocation5], 0 }
   0x3   :  { %13 = vsyncpa [#allocation5 + $0x1], 0  ;;  %s1449_s12 = smov 0   ;;  %s1451_s13 = smov 0  }
   0x4   :  { %s1453_s14 = smov 0   ;;  %s1455_s15 = smov 0  }
   0x5 LB: > { %s1470_s16 = sadd.s32 4294967295, %s1413_s15   ;;  %s1178_s17 = sadd.s32 4294967294, %s1413_s15   ;;  %s1413_s15 = sphi %s1455_s15, %s1925_s15   ;;  %s1409_s14 = sphi %s1453_s14, %s1924_s14   ;;  %s1405_s13 = sphi %s1451_s13, %s1923_s13   ;;  %s1401_s12 = sphi %s1449_s12, %s1922_s12  }
   0x6   : > { %s1474_s18 = sadd.s32 1, %s1413_s15   ;;  %s68_s19 = sadd.s32 1, %s1409_s14 }
   0x7   : > { %s65_s20 = ssub.s32 %s1413_s15, %s1474_s18  ;;  %p75_p0 = scmp.ne.s32.totalorder %s1409_s14, %s1405_s13 }
   0x8   : > { %p66_p1 = scmp.eq.s32.totalorder %s65_s20, 0  ;;  %p76_p2 = scmp.eq.s32.totalorder %s1413_s15, 0 }
   0x9   : > { %p81_p3 = scmp.ne.s32.totalorder %s1405_s13, %s1401_s12  ;;  %p82_p4 = scmp.eq.s32.totalorder %s1470_s16, 0 }
   0xa   : > { %s1486_s21 = scalar_select %p66_p1, %s1409_s14, %s68_s19  }
   0xb   : > { %p1488_p5 = por %p76_p2, %p75_p0  ;;  %p1492_p6 = por %p82_p4, %p81_p3 }
   0xc   : > { %p105_p7 = scmp.eq.s32.totalorder %s1470_s16, 1  ;;  %p111_p8 = scmp.eq.s32.totalorder %s1178_s17, 1 }
   0xd   : > { %p1268_p10 = scmp.lt.s32.totalorder %s1413_s15, 2  ;;  %s137_s26 = sand.u32 1, %s1409_s14  }
   0xe   : > { %p1499_p11 = por %p105_p7, %p75_p0  ;;  %p1503_p12 = por %p111_p8, %p81_p3 }
   0xf   : > { %s1191_s27 = sshll.u32 %s1413_s15, 8  ;;  %s1181_s28 = sshll.u32 %s137_s26, 4 }
  0x10   : > { %s1916_s24 = scalar_select %p1499_p11, 1, 0 }
  0x11   : > { %s1917_s25 = scalar_select %p1503_p12, 1, 0 }
  0x12   : > { %s1512_s4 = scalar_lea.hbm %s1911_s2, %s1191_s27  ;;  %s141_s5 = scalar_lea.vmem [#allocation3], %s1181_s28 }
  0x13   : > { %s148_s6 = sshll.u32 %s141_s5, 4  ;;  %p1516_p13 = pnand %p1268_p10, %p1488_p5  ;;  %s1520_s6 = int_to_ptr.vmem [resolvable:$true] %s148_s6 }
  0x14   : > { %s1522_s8 = scalar_lea.sflag [#allocation4], %s137_s26  ;;  %s1317_s9 = scalar_lea.hbm %s1512_s4, 256 }
  0x15   : > { %p1318_p0 = scmp.ne.s32.totalorder %s1512_s4, %s1317_s9  ;;  %p1319_p1 = pneg %p1516_p13 }
  0x16   : > { %s1322_s17 = scalar_lea.hbm %s1911_s2, 512  ;;  %p1323_p4 = scmp.lt.u32.totalorder %s1512_s4, %s1911_s2 }
  0x17   : > { %p1320_p2 = pnand %p1319_p1, %p1318_p0  ;;  %p1324_p5 = scmp.lt.u32.totalorder %s1322_s17, %s1317_s9 }
  0x18   : > { %p1326_p8 = scmp.lt.u32.totalorder %s1317_s9, %s1512_s4 }
  0x19   : > { %p1321_p3 = pneg %p1320_p2  ;;  %p1325_p7 = por %p1324_p5, %p1323_p4 }
  0x1b   : > { %p1327_p10 = por %p1326_p8, %p1325_p7 }
  0x1d   : > { %p1328_p9 = pnand %p1327_p10, %p1321_p3 }
  0x1f   : > { %1331 = shalt.err (!%p1328_p9)
}
  0x20   : > { %s1332_s22 = scalar_lea.vmem %s1520_s6, 256  ;;  %s1415_s26 = smov [#allocation3]  }
  0x21   : > { %p1333_p0 = scmp.ne.s32.totalorder %s1520_s6, %s1332_s22  ;;  %s1337_s27 = sshll.u32 %s1415_s26, 4  ;;  %s1338_s27 = int_to_ptr.vmem [resolvable:$false] %s1337_s27 }
  0x22   : > { %s1339_s28 = scalar_lea.vmem %s1338_s27, 512  ;;  %p1340_p11 = scmp.lt.s32.totalorder %s1520_s6, %s1338_s27 }
  0x23   : > { %p1335_p2 = pnand %p1333_p0, %p1319_p1  ;;  %p1341_p4 = scmp.lt.s32.totalorder %s1339_s28, %s1332_s22 }
  0x25   : > { %p1336_p12 = pneg %p1335_p2  ;;  %p1342_p5 = por %p1341_p4, %p1340_p11 }
  0x27   : > { %p1343_p7 = pnand %p1342_p5, %p1336_p12 }
  0x29   : > { %1346 = shalt.err (!%p1343_p7)
}
  0x2a   : > { %s1416_s29 = smov 128   ;;  %s1417_s30 = smov 8  }
  0x2b   : > { %1263 = dma.hbm_to_vmem [thread:$0]  (!%p1516_p13), %s1512_s4, 256, %s1520_s6, %s1522_s8, %s1416_s29, %s1416_s29, %s1417_s30  }
  0x2c   : > { %p1184_p9 = scmp.ge.s32.totalorder %s1413_s15, 1  ;;  %p156_p1 = scmp.lt.s32.totalorder %s1413_s15, 3 }
  0x2e   : > { %p157_p3 = pnand %p1184_p9, %p156_p1 }
  0x2f   : > { %s1553_s5 = sand.u32 (!%p157_p3), 1, %s1405_s13  }
  0x30   : > { %160 = sbr.rel (%p157_p3) target bundleno = 606 (0x25e), region = 32  ;;  %s1185_s9 = sshll.u32 (!%p157_p3), %s1553_s5, 4 }
  0x31   : > { %s163_s10 = scalar_lea.sflag (!%p157_p3), [#allocation4], %s1553_s5  ;;  %s1557_s11 = scalar_lea.vmem (!%p157_p3), [#allocation3], %s1185_s9 }
  0x37   : > { %1392 = dma.done.wait (%p1492_p6), %s163_s10, 256  }
  0x38   : > { %1394 = vsyncadd (%p1492_p6), %s163_s10, 4294967040  ;;  %v1418_v0 = vmov 0.0   ;;  %v293_v1 = vld [vmem:[%s1557_s11 + $0x4] sm:$0xf]  ;;  %v268_v2 = vld [vmem:[%s1557_s11] sm:$0xf] }
  0x39   : > { %194 = vst [vmem:[#allocation2 + $0x28] sm:$0xff] %v1418_v0  ;;  %189 = vst [vmem:[#allocation2] sm:$0xff] %v1418_v0  ;;  %1004 = vmatprep.mubr.f32.mxu0 %v1418_v0  ;;  %1075 = vmatprep.mubr.f32.mxu1 %v1418_v0  ;;  %s1419_s23 = smov 127   ;;  %v270_v3 = vrot.slane %v268_v2, 4  ;;  %v280_v4 = vld [vmem:[%s1557_s11 + $0x8] sm:$0xf] }
  0x3a   : > { %190 = vst [vmem:[#allocation2 + $0x8] sm:$0xff] %v1418_v0  ;;  %191 = vst [vmem:[#allocation2 + $0x10] sm:$0xff] %v1418_v0  ;;  %295 = vrot.lane.b32.xlu1 %v293_v1, %s1419_s23  ;;  %v305_v5 = vld [vmem:[%s1557_s11 + $0xc] sm:$0xf]  ;;  %v332_v6 = vld [vmem:[%s1557_s11 + $0x8] sm:$0xf] }
  0x3b   : > { %192 = vst [vmem:[#allocation2 + $0x18] sm:$0xff] %v1418_v0  ;;  %193 = vst [vmem:[#allocation2 + $0x20] sm:$0xff] %v1418_v0  ;;  %271 = vrot.lane.b32.xlu0 %v270_v3, %s1419_s23  ;;  %v282_v7 = vrot.slane %v280_v4, 4  ;;  %v318_v8 = vld [vmem:[%s1557_s11] sm:$0xf]  ;;  %v334_v9 = vrot.slane %v332_v6, 4 }
  0x3c   : > { %195 = vst [vmem:[#allocation2 + $0x30] sm:$0xff] %v1418_v0  ;;  %196 = vst [vmem:[#allocation2 + $0x38] sm:$0xff] %v1418_v0  ;;  %v320_v10 = vrot.slane %v318_v8, 4  ;;  %s1420_s4 = smov 126   ;;  %v299_v11 = vld [vmem:[%s1557_s11 + $0x8] sm:$0xf] }
  0x3d   : > { %197 = vst [vmem:[#allocation2 + $0x40] sm:$0xff] %v1418_v0  ;;  %198 = vst [vmem:[#allocation2 + $0x48] sm:$0xff] %v1418_v0  ;;  %v325_v12 = vld [vmem:[%s1557_s11 + $0xc] sm:$0xf]  ;;  %v287_v13 = vld [vmem:[%s1557_s11] sm:$0xf] }
  0x3e   : > { %199 = vst [vmem:[#allocation2 + $0x50] sm:$0xff] %v1418_v0  ;;  %200 = vst [vmem:[#allocation2 + $0x58] sm:$0xff] %v1418_v0  ;;  %307 = vrot.lane.b32.xlu1 %v305_v5, %s1419_s23  ;;  %v311_v14 = vld [vmem:[%s1557_s11 + $0x4] sm:$0xf]  ;;  %v327_v15 = vrot.slane %v325_v12, 4  ;;  %vm254_vm0 = vcmask 650240  }
  0x3f   : > { %201 = vst [vmem:[#allocation2 + $0x60] sm:$0xff] %v1418_v0  ;;  %202 = vst [vmem:[#allocation2 + $0x68] sm:$0xff] %v1418_v0  ;;  %283 = vrot.lane.b32.xlu0 %v282_v7, %s1419_s23  ;;  %v313_v16 = vrot.slane %v311_v14, 4  ;;  %v357_v17 = vld [vmem:[%s1557_s11 + $0xc] sm:$0xf]  ;;  %s1421_s6 = smov 118  }
  0x40   : > { %203 = vst [vmem:[#allocation2 + $0x70] sm:$0xff] %v1418_v0  ;;  %204 = vst [vmem:[#allocation2 + $0x78] sm:$0xff] %v1418_v0  ;;  %v345_v18 = vld [vmem:[%s1557_s11 + $0x4] sm:$0xf]  ;;  %v389_v20 = vld [vmem:[%s1557_s11 + $0x8] sm:$0xf] }
  0x41   : > { %205 = vst [vmem:[#allocation2 + $0x80] sm:$0xff] %v1418_v0  ;;  %206 = vst [vmem:[#allocation2 + $0x88] sm:$0xff] %v1418_v0  ;;  %v380_v19 = vld [vmem:[%s1557_s11 + $0x4] sm:$0xf]  ;;  %v414_v21 = vld [vmem:[%s1557_s11 + $0xc] sm:$0xf] }
  0x42   : > { %207 = vst [vmem:[#allocation2 + $0x90] sm:$0xff] %v1418_v0  ;;  %208 = vst [vmem:[#allocation2 + $0x98] sm:$0xff] %v1418_v0  ;;  %335 = vrot.lane.b32.xlu1 %v334_v9, %s1420_s4  ;;  %v382_v22 = vrot.slane %v380_v19, 4  ;;  %v416_v23 = vrot.slane %v414_v21, 4  ;;  %v401_v24 = vld [vmem:[%s1557_s11] sm:$0xf] }
  0x43   : > { %209 = vst [vmem:[#allocation2 + $0xa0] sm:$0xff] %v1418_v0  ;;  %210 = vst [vmem:[#allocation2 + $0xa8] sm:$0xff] %v1418_v0  ;;  %321 = vrot.lane.b32.xlu0 %v320_v10, %s1420_s4  ;;  %v428_v25 = vld [vmem:[%s1557_s11 + $0x4] sm:$0xf]  ;;  %v260_v27 = vld [vmem:[%s1557_s11 + $0xc] sm:$0xf] }
  0x44   : > { %211 = vst [vmem:[#allocation2 + $0xb0] sm:$0xff] %v1418_v0  ;;  %212 = vst [vmem:[#allocation2 + $0xb8] sm:$0xff] %v1418_v0  ;;  %v256_v26 = vld [vmem:[%s1557_s11 + $0x4] sm:$0xf]  ;;  %v339_v28 = vld [vmem:[%s1557_s11] sm:$0xf] }
  0x45   : > { %213 = vst [vmem:[#allocation2 + $0xc0] sm:$0xff] %v1418_v0  ;;  %214 = vst [vmem:[#allocation2 + $0xc8] sm:$0xff] %v1418_v0  ;;  %v373_v29 = vld [vmem:[%s1557_s11] sm:$0xf]  ;;  %s1422_s7 = smov 117   ;;  %v430_v30 = vrot.slane %v428_v25, 4 }
  0x46   : > { %215 = vst [vmem:[#allocation2 + $0xd0] sm:$0xff] %v1418_v0  ;;  %216 = vst [vmem:[#allocation2 + $0xd8] sm:$0xff] %v1418_v0  ;;  %301 = vrot.lane.b32.xlu1 %v299_v11, %s1419_s23  ;;  %v375_v31 = vrot.slane %v373_v29, 4  ;;  %v368_v32 = vld [vmem:[%s1557_s11 + $0xc] sm:$0xf]  ;;  %vm266_vm1 = vcmask 654340  }
  0x47   : > { %217 = vst [vmem:[#allocation2 + $0xe0] sm:$0xff] %v1418_v0  ;;  %218 = vst [vmem:[#allocation2 + $0xe8] sm:$0xff] %v1418_v0  ;;  %289 = vrot.lane.b32.xlu0 %v287_v13, %s1419_s23  ;;  %v407_v33 = vld [vmem:[%s1557_s11 + $0x8] sm:$0xf]  ;;  %v370_v34 = vrot.slane %v368_v32, 4  ;;  %s1423_s8 = smov 116  }
  0x48   : > { %219 = vst [vmem:[#allocation2 + $0xf0] sm:$0xff] %v1418_v0  ;;  %220 = vst [vmem:[#allocation2 + $0xf8] sm:$0xff] %v1418_v0  ;;  %v351_v35 = vld [vmem:[%s1557_s11 + $0x8] sm:$0xf]  ;;  %v253_v36 = vld [vmem:[%s1557_s11] sm:$0xf] }
  0x49   : > { %221 = vst [vmem:[#allocation2 + $0x100] sm:$0xff] %v1418_v0  ;;  %222 = vst [vmem:[#allocation2 + $0x108] sm:$0xff] %v1418_v0  ;;  %v262_v37 = vld [vmem:[%s1557_s11 + $0x4] sm:$0xf]  ;;  %v258_v39 = vld [vmem:[%s1557_s11 + $0x8] sm:$0xf] }
  0x4a   : > { %223 = vst [vmem:[#allocation2 + $0x110] sm:$0xff] %v1418_v0  ;;  %224 = vst [vmem:[#allocation2 + $0x118] sm:$0xff] %v1418_v0  ;;  %328 = vrot.lane.b32.xlu1 %v327_v15, %s1419_s23  ;;  %v264_v38 = vrot.slane %v262_v37, 4  ;;  %v275_v40 = vld [vmem:[%s1557_s11 + $0xc] sm:$0xf]  ;;  %v409_v41 = vrot.slane %v407_v33, 4 }
  0x4b   : > { %225 = vst [vmem:[#allocation2 + $0x120] sm:$0xff] %v1418_v0  ;;  %226 = vst [vmem:[#allocation2 + $0x128] sm:$0xff] %v1418_v0  ;;  %314 = vrot.lane.b32.xlu0 %v313_v16, %s1419_s23  ;;  %v277_v42 = vrot.slane %v275_v40, 4  ;;  %v363_v43 = vld [vmem:[%s1557_s11 + $0x8] sm:$0xf]  ;;  %s1424_s17 = smov 108  }
  0x4c   : > { %227 = vst [vmem:[#allocation2 + $0x130] sm:$0xff] %v1418_v0  ;;  %228 = vst [vmem:[#allocation2 + $0x138] sm:$0xff] %v1418_v0  ;;  %v365_v44 = vrot.slane %v363_v43, 4  ;;  %v387_v45 = vld [vmem:[%s1557_s11 + $0xc] sm:$0xf]  ;;  %s1425_s19 = smov 107  }
  0x4d   : > { %229 = vst [vmem:[#allocation2 + $0x140] sm:$0xff] %v1418_v0  ;;  %230 = vst [vmem:[#allocation2 + $0x148] sm:$0xff] %v1418_v0  ;;  %v395_v46 = vld [vmem:[%s1557_s11 + $0x4] sm:$0xf]  ;;  %v421_v47 = vld [vmem:[%s1557_s11] sm:$0xf] }
  0x4e   : > { %231 = vst [vmem:[#allocation2 + $0x150] sm:$0xff] %v1418_v0  ;;  %232 = vst [vmem:[#allocation2 + $0x158] sm:$0xff] %v1418_v0  ;;  %359 = vrot.lane.b32.xlu1 %v357_v17, %s1420_s4  ;;  %v441_v48 = vld [vmem:[%s1557_s11 + $0x8] sm:$0xf]  ;;  %v466_v49 = vld [vmem:[%s1557_s11 + $0xc] sm:$0xf] }
  0x4f   : > { %233 = vst [vmem:[#allocation2 + $0x160] sm:$0xff] %v1418_v0  ;;  %234 = vst [vmem:[#allocation2 + $0x168] sm:$0xff] %v1418_v0  ;;  %347 = vrot.lane.b32.xlu0 %v345_v18, %s1420_s4  ;;  %v423_v50 = vrot.slane %v421_v47, 4  ;;  %v468_v51 = vrot.slane %v466_v49, 4  ;;  %v453_v52 = vld [vmem:[%s1557_s11] sm:$0xf] }
  0x50   : > { %235 = vst [vmem:[#allocation2 + $0x170] sm:$0xff] %v1418_v0  ;;  %236 = vst [vmem:[#allocation2 + $0x178] sm:$0xff] %v1418_v0  ;;  %v480_v53 = vld [vmem:[%s1557_s11 + $0x4] sm:$0xf]  ;;  %v518_v55 = vld [vmem:[%s1557_s11] sm:$0xf] }
  0x51   : > { %237 = vst [vmem:[#allocation2 + $0x180] sm:$0xff] %v1418_v0  ;;  %238 = vst [vmem:[#allocation2 + $0x188] sm:$0xff] %v1418_v0  ;;  %v493_v54 = vld [vmem:[%s1557_s11 + $0x4] sm:$0xf]  ;;  %v482_v56 = vrot.slane %v480_v53, 4  ;;  %v520_v57 = vrot.slane %v518_v55, 4 }
  0x52   : > { %239 = vst [vmem:[#allocation2 + $0x190] sm:$0xff] %v1418_v0  ;;  %240 = vst [vmem:[#allocation2 + $0x198] sm:$0xff] %v1418_v0  ;;  %391 = vrot.lane.b32.xlu1 %v389_v20, %s1419_s23  ;;  %v505_v58 = vld [vmem:[%s1557_s11 + $0xc] sm:$0xf]  ;;  %v532_v59 = vld [vmem:[%s1557_s11 + $0x8] sm:$0xf] }
  0x53   : > { %383 = vrot.lane.b32.xlu0 %v382_v22, %s1421_s6  ;;  %257 = vst.msk [vmem:[#allocation2 + $0x8] sm:$0xf] %vm254_vm0, %v256_v26  ;;  %261 = vst.msk [vmem:[#allocation2 + $0x18] sm:$0xf] %vm254_vm0, %v260_v27  ;;  %v435_v60 = vld [vmem:[%s1557_s11 + $0xc] sm:$0xf] }
  0x54   : > { %372 = vst.msk [vmem:[#allocation2 + $0x48] sm:$0xf0] %vm266_vm1, %v370_v34  ;;  %267 = vst.msk [vmem:[#allocation2] sm:$0xf0] %vm266_vm1, %v264_v38  ;;  %v459_v61 = vld [vmem:[%s1557_s11 + $0x8] sm:$0xf] }
  0x55   : > { %255 = vst.msk [vmem:[#allocation2] sm:$0xf] %vm254_vm0, %v253_v36  ;;  %259 = vst.msk [vmem:[#allocation2 + $0x10] sm:$0xf] %vm254_vm0, %v258_v39  ;;  %v534_v62 = vrot.slane %v532_v59, 4  ;;  %v461_v63 = vrot.slane %v459_v61, 4 }
  0x56   : > { %417 = vrot.lane.b32.xlu1 %v416_v23, %s1419_s23  ;;  %279 = vst.msk [vmem:[#allocation2 + $0x10] sm:$0xf0] %vm266_vm1, %v277_v42  ;;  %367 = vst.msk [vmem:[#allocation2 + $0x40] sm:$0xf0] %vm266_vm1, %v365_v44  ;;  %v447_v0 = vld [vmem:[%s1557_s11 + $0x4] sm:$0xf] }
  0x57   : > { %403 = vrot.lane.b32.xlu0 %v401_v24, %s1422_s7  ;;  %388 = vst.msk [vmem:[#allocation2 + $0x60] sm:$0xf] %vm254_vm0, %v387_v45  ;;  %v473_v1 = vld [vmem:[%s1557_s11] sm:$0xf]  ;;  %v511_v3 = vld [vmem:[%s1557_s11 + $0x4] sm:$0xf] }
  0x58   : > { %v487_v2 = vld [vmem:[%s1557_s11] sm:$0xf]  ;;  %v475_v4 = vrot.slane %v473_v1, 4  ;;  %v513_v5 = vrot.slane %v511_v3, 4  ;;  %v499_v6 = vld [vmem:[%s1557_s11 + $0x8] sm:$0xf] }
  0x59   : > { %v525_v7 = vld [vmem:[%s1557_s11 + $0xc] sm:$0xf]  ;;  %v545_v8 = vld [vmem:[%s1557_s11 + $0x4] sm:$0xf]  ;;  %v570_v9 = vld [vmem:[%s1557_s11] sm:$0xf] }
  0x5a   : > { %341 = vrot.lane.b32.xlu1 %v339_v28, %s1420_s4  ;;  %v527_v10 = vrot.slane %v525_v7, 4  ;;  %v572_v11 = vrot.slane %v570_v9, 4  ;;  %v557_v12 = vld [vmem:[%s1557_s11 + $0xc] sm:$0xf]  ;;  %v584_v13 = vld [vmem:[%s1557_s11 + $0x8] sm:$0xf] }
  0x5b   : > { %431 = vrot.lane.b32.xlu0 %v430_v30, %s1422_s7  ;;  %v597_v14 = vld [vmem:[%s1557_s11 + $0x4] sm:$0xf]  ;;  %v622_v15 = vld [vmem:[%s1557_s11 + $0xc] sm:$0xf]  ;;  %v586_v16 = vrot.slane %v584_v13, 4  ;;  %s1426_s20 = smov 106  }
  0x5c   : > { %v624_v17 = vrot.slane %v622_v15, 4  ;;  %v609_v18 = vld [vmem:[%s1557_s11 + $0xc] sm:$0xf]  ;;  %v636_v19 = vld [vmem:[%s1557_s11 + $0x4] sm:$0xf]  ;;  %s1186_s29 = sshll.u32 %s1553_s5, 3 }
  0x5d   : > { %v539_v20 = vld [vmem:[%s1557_s11] sm:$0xf]  ;;  %v563_v21 = vld [vmem:[%s1557_s11 + $0x4] sm:$0xf]  ;;  %v638_v22 = vrot.slane %v636_v19, 4  ;;  %s1188_s30 = sshll.u32 %s1470_s16, 7 }
  0x5e   : > { %376 = vrot.lane.b32.xlu1 %v375_v31, %s1421_s6  ;;  %v565_v23 = vrot.slane %v563_v21, 4  ;;  %v551_v24 = vld [vmem:[%s1557_s11 + $0x8] sm:$0xf]  ;;  %v577_v25 = vld [vmem:[%s1557_s11 + $0xc] sm:$0xf]  ;;  %v876_v15 = vld [vmem:[#allocation2] sm:$0xff] }
  0x5f   : > { %353 = vrot.lane.b32.xlu0 %v351_v35, %s1420_s4  ;;  %v591_v26 = vld [vmem:[%s1557_s11] sm:$0xf]  ;;  %v615_v27 = vld [vmem:[%s1557_s11 + $0x8] sm:$0xf]  ;;  %v579_v28 = vrot.slane %v577_v25, 4  ;;  %s188_s9 = scalar_lea.vmem [#allocation6], %s1186_s29 }
  0x60   : > { %v617_v29 = vrot.slane %v615_v27, 4  ;;  %v603_v30 = vld [vmem:[%s1557_s11 + $0x8] sm:$0xf]  ;;  %v629_v31 = vld [vmem:[%s1557_s11] sm:$0xf]  ;;  %s1108_s10 = sshll.u32 %s188_s9, 4  ;;  %s1867_s10 = int_to_ptr.vmem [resolvable:$true] %s1108_s10 }
  0x61   : > { %v649_v32 = vld [vmem:[%s1557_s11 + $0x8] sm:$0xf]  ;;  %v674_v33 = vld [vmem:[%s1557_s11 + $0xc] sm:$0xf]  ;;  %v631_v34 = vrot.slane %v629_v31, 4  ;;  %p1919_p11 = scmp.ne.s32.totalorder %s1916_s24, 0 }
  0x62   : > { %410 = vrot.lane.b32.xlu1 %v409_v41, %s1419_s23  ;;  %v676_v35 = vrot.slane %v674_v33, 4  ;;  %v661_v36 = vld [vmem:[%s1557_s11] sm:$0xf]  ;;  %v688_v37 = vld [vmem:[%s1557_s11 + $0x4] sm:$0xf]  ;;  %s1428_s16 = smov [#allocation6]  }
  0x63   : > { %397 = vrot.lane.b32.xlu0 %v395_v46, %s1421_s6  ;;  %v701_v38 = vld [vmem:[%s1557_s11 + $0x8] sm:$0xf]  ;;  %v726_v39 = vld [vmem:[%s1557_s11 + $0xc] sm:$0xf]  ;;  %v690_v41 = vrot.slane %v688_v37, 4 }
  0x64   : > { %v728_v43 = vrot.slane %v726_v39, 4  ;;  %v713_v45 = vld [vmem:[%s1557_s11] sm:$0xf]  ;;  %v740_v46 = vld [vmem:[%s1557_s11 + $0x4] sm:$0xf] }
  0x65   : > { %v667_v49 = vld [vmem:[%s1557_s11 + $0x8] sm:$0xf]  ;;  %v655_v55 = vld [vmem:[%s1557_s11 + $0x4] sm:$0xf]  ;;  %v830_v27 = vld [vmem:[%s1557_s11] sm:$0xf] }
  0x66   : > { %443 = vrot.lane.b32.xlu1 %v441_v48, %s1420_s4  ;;  %v643_v48 = vld [vmem:[%s1557_s11 + $0xc] sm:$0xf]  ;;  %v669_v53 = vrot.slane %v667_v49, 4  ;;  %v719_v59 = vld [vmem:[%s1557_s11 + $0x8] sm:$0xf]  ;;  %v832_v31 = vrot.slane %v830_v27, 4 }
  0x67   : > { %424 = vrot.lane.b32.xlu0 %v423_v50, %s1422_s7  ;;  %v707_v7 = vld [vmem:[%s1557_s11 + $0x4] sm:$0xf]  ;;  %v844_v37 = vld [vmem:[%s1557_s11 + $0x8] sm:$0xf]  ;;  %v747_v39 = vld [vmem:[%s1557_s11] sm:$0xf] }
  0x68   : > { %v759_v49 = vld [vmem:[%s1557_s11 + $0x8] sm:$0xf] }
  0x6a   : > { %469 = vrot.lane.b32.xlu1 %v468_v51, %s1420_s4  ;;  %v742_v51 = vrot.slane %v740_v46, 4 }
  0x6b   : > { %455 = vrot.lane.b32.xlu0 %v453_v52, %s1423_s8 }
  0x6e   : > { %495 = vrot.lane.b32.xlu1 %v493_v54, %s1421_s6 }
  0x6f   : > { %483 = vrot.lane.b32.xlu0 %v482_v56, %s1423_s8  ;;  %v681_v56 = vld [vmem:[%s1557_s11] sm:$0xf] }
  0x72   : > { %521 = vrot.lane.b32.xlu1 %v520_v57, %s1422_s7 }
  0x73   : > { %507 = vrot.lane.b32.xlu0 %v505_v58, %s1421_s6  ;;  %v695_v58 = vld [vmem:[%s1557_s11 + $0xc] sm:$0xf] }
  0x76   : > { %437 = vrot.lane.b32.xlu1 %v435_v60, %s1419_s23 }
  0x77   : > { %535 = vrot.lane.b32.xlu0 %v534_v62, %s1422_s7 }
  0x7a   : > { %462 = vrot.lane.b32.xlu1 %v461_v63, %s1420_s4  ;;  %v683_v63 = vrot.slane %v681_v56, 4  ;;  %s1865_s4 = scalar_lea.hbm %s1912_s3, %s1188_s30 }
  0x7b   : > { %449 = vrot.lane.b32.xlu0 %v447_v0, %s1422_s7 }
  0x7e   : > { %489 = vrot.lane.b32.xlu1 %v487_v2, %s1421_s6 }
  0x7f   : > { %476 = vrot.lane.b32.xlu0 %v475_v4, %s1423_s8  ;;  %v721_v4 = vrot.slane %v719_v59, 4 }
  0x82   : > { %514 = vrot.lane.b32.xlu1 %v513_v5, %s1421_s6 }
  0x83   : > { %501 = vrot.lane.b32.xlu0 %v499_v6, %s1421_s6 }
  0x86   : > { %547 = vrot.lane.b32.xlu1 %v545_v8, %s1422_s7  ;;  %v733_v8 = vld [vmem:[%s1557_s11] sm:$0xf] }
  0x87   : > { %528 = vrot.lane.b32.xlu0 %v527_v10, %s1421_s6  ;;  %v878_v10 = vld [vmem:[#allocation2 + $0x10] sm:$0xff] }
  0x8a   : > { %573 = vrot.lane.b32.xlu1 %v572_v11, %s1423_s8  ;;  %v753_v11 = vld [vmem:[%s1557_s11 + $0x4] sm:$0xf] }
  0x8b   : > { %559 = vrot.lane.b32.xlu0 %v557_v12, %s1422_s7  ;;  %v778_v12 = vld [vmem:[%s1557_s11] sm:$0xf] }
  0x8e   : > { %599 = vrot.lane.b32.xlu1 %v597_v14, %s1423_s8  ;;  %v735_v14 = vrot.slane %v733_v8, 4  ;;  %v851_v8 = vld [vmem:[%s1557_s11] sm:$0xf] }
  0x8f   : > { %587 = vrot.lane.b32.xlu0 %v586_v16, %s1423_s8 }
  0x92   : > { %625 = vrot.lane.b32.xlu1 %v624_v17, %s1421_s6 }
  0x93   : > { %611 = vrot.lane.b32.xlu0 %v609_v18, %s1423_s8 }
  0x96   : > { %541 = vrot.lane.b32.xlu1 %v539_v20, %s1422_s7  ;;  %v780_v20 = vrot.slane %v778_v12, 4 }
  0x97   : > { %639 = vrot.lane.b32.xlu0 %v638_v22, %s1424_s17 }
  0x9a   : > { %566 = vrot.lane.b32.xlu1 %v565_v23, %s1422_s7  ;;  %v765_v23 = vld [vmem:[%s1557_s11 + $0xc] sm:$0xf] }
  0x9b   : > { %553 = vrot.lane.b32.xlu0 %v551_v24, %s1422_s7  ;;  %v792_v24 = vld [vmem:[%s1557_s11 + $0x8] sm:$0xf] }
  0x9e   : > { %593 = vrot.lane.b32.xlu1 %v591_v26, %s1423_s8  ;;  %v805_v26 = vld [vmem:[%s1557_s11 + $0x4] sm:$0xf] }
  0x9f   : > { %580 = vrot.lane.b32.xlu0 %v579_v28, %s1422_s7 }
  0xa2   : > { %618 = vrot.lane.b32.xlu1 %v617_v29, %s1421_s6  ;;  %v794_v29 = vrot.slane %v792_v24, 4  ;;  %v1085_v24 = vld [vmem:[%s1910_s1] sm:$0xff] }
  0xa3   : > { %605 = vrot.lane.b32.xlu0 %v603_v30, %s1423_s8 }
  0xa6   : > { %651 = vrot.lane.b32.xlu1 %v649_v32, %s1422_s7 }
  0xa7   : > { %632 = vrot.lane.b32.xlu0 %v631_v34, %s1424_s17 }
  0xaa   : > { %677 = vrot.lane.b32.xlu1 %v676_v35, %s1422_s7 }
  0xab   : > { %663 = vrot.lane.b32.xlu0 %v661_v36, %s1425_s19  ;;  %v817_v36 = vld [vmem:[%s1557_s11 + $0xc] sm:$0xf] }
  0xac   : > { %v296_v40 = vpop.permute.xlu1 %295 }
  0xad   : > { %298 = vst.msk [vmem:[#allocation2 + $0x28] sm:$0xf] %vm254_vm0, %v296_v40  ;;  %v272_v42 = vpop.permute.xlu0 %271  ;;  %v771_v40 = vld [vmem:[%s1557_s11 + $0x4] sm:$0xf] }
  0xae   : > { %703 = vrot.lane.b32.xlu1 %v701_v38, %s1423_s8  ;;  %274 = vst.msk [vmem:[#allocation2 + $0x8] sm:$0xf0] %vm266_vm1, %v272_v42  ;;  %v846_v42 = vrot.slane %v844_v37, 4  ;;  %v773_v46 = vrot.slane %v771_v40, 4 }
  0xaf   : > { %691 = vrot.lane.b32.xlu0 %v690_v41, %s1425_s19 }
  0xb0   : > { %v308_v44 = vpop.permute.xlu1 %307 }
  0xb1   : > { %310 = vst.msk [vmem:[#allocation2 + $0x38] sm:$0xf] %vm254_vm0, %v308_v44  ;;  %v284_v47 = vpop.permute.xlu0 %283 }
  0xb2   : > { %729 = vrot.lane.b32.xlu1 %v728_v43, %s1423_s8  ;;  %286 = vst.msk [vmem:[#allocation2 + $0x18] sm:$0xf0] %vm266_vm1, %v284_v47 }
  0xb3   : > { %715 = vrot.lane.b32.xlu0 %v713_v45, %s1426_s20 }
  0xb4   : > { %v336_v50 = vpop.permute.xlu1 %335 }
  0xb5   : > { %338 = vst.msk [vmem:[#allocation2 + $0x38] sm:$0xf0] %vm266_vm1, %v336_v50  ;;  %v322_v52 = vpop.permute.xlu0 %321  ;;  %v877_v2 = vld [vmem:[#allocation2 + $0x8] sm:$0xff] }
  0xb6   : > { %645 = vrot.lane.b32.xlu1 %v643_v48, %s1421_s6  ;;  %324 = vst.msk [vmem:[#allocation2 + $0x28] sm:$0xf0] %vm266_vm1, %v322_v52  ;;  %v785_v50 = vld [vmem:[%s1557_s11 + $0xc] sm:$0xf]  ;;  %v799_v52 = vld [vmem:[%s1557_s11] sm:$0xf] }
  0xb7   : > { %743 = vrot.lane.b32.xlu0 %v742_v51, %s1426_s20  ;;  %s1095_s6 = scalar_lea.sflag [#allocation5], %s1553_s5 }
  0xb8   : > { %v302_v54 = vpop.permute.xlu1 %301 }
  0xb9   : > { %304 = vst.msk [vmem:[#allocation2 + $0x30] sm:$0xf] %vm254_vm0, %v302_v54  ;;  %v290_v57 = vpop.permute.xlu0 %289  ;;  %v879_v61 = vld [vmem:[#allocation2 + $0x18] sm:$0xff] }
  0xba   : > { %670 = vrot.lane.b32.xlu1 %v669_v53, %s1422_s7  ;;  %292 = vst.msk [vmem:[#allocation2 + $0x20] sm:$0xf] %vm254_vm0, %v290_v57  ;;  %v823_v53 = vld [vmem:[%s1557_s11 + $0x4] sm:$0xf]  ;;  %v787_v57 = vrot.slane %v785_v50, 4 }
  0xbb   : > { %657 = vrot.lane.b32.xlu0 %v655_v55, %s1424_s17 }
  0xbc   : > { %v329_v60 = vpop.permute.xlu1 %328  ;;  %v883_v62 = vld [vmem:[#allocation2 + $0x38] sm:$0xff] }
  0xbd   : > { %331 = vst.msk [vmem:[#allocation2 + $0x30] sm:$0xf0] %vm266_vm1, %v329_v60  ;;  %v1224_v0 = vpack.c.bf16 %v883_v62, %v879_v61  ;;  %v315_v1 = vpop.permute.xlu0 %314  ;;  %v881_v3 = vld [vmem:[#allocation2 + $0x28] sm:$0xff]  ;;  %v825_v60 = vrot.slane %v823_v53, 4 }
  0xbe   : > { %697 = vrot.lane.b32.xlu1 %v695_v58, %s1422_s7  ;;  %317 = vst.msk [vmem:[#allocation2 + $0x20] sm:$0xf0] %vm266_vm1, %v315_v1  ;;  %v1192_v5 = vpack.c.bf16 %v881_v3, %v877_v2  ;;  %v811_v62 = vld [vmem:[%s1557_s11 + $0x8] sm:$0xf]  ;;  %s1347_s7 = scalar_lea.vmem %s1867_s10, 128 }
  0xbf   : > { %1225 = vmatprep.subr.bf16.mxu1 %v1224_v0  ;;  %684 = vrot.lane.b32.xlu0 %v683_v63, %s1425_s19  ;;  %v837_v63 = vld [vmem:[%s1557_s11 + $0xc] sm:$0xf]  ;;  %p1348_p6 = scmp.ne.s32.totalorder %s1867_s10, %s1347_s7 }
  0xc0   : > { %v360_v6 = vpop.permute.xlu1 %359  ;;  %1193 = vmatprep.subr.bf16.mxu0 %v1192_v5 }
  0xc1   : > { %362 = vst.msk [vmem:[#allocation2 + $0x58] sm:$0xf] %vm254_vm0, %v360_v6  ;;  %v348_v9 = vpop.permute.xlu0 %347  ;;  %v839_v6 = vrot.slane %v837_v63, 4  ;;  %p1349_p12 = pnand %p1348_p6, %p1919_p11 }
  0xc2   : > { %722 = vrot.lane.b32.xlu1 %v721_v4, %s1423_s8  ;;  %350 = vst.msk [vmem:[#allocation2 + $0x48] sm:$0xf] %vm254_vm0, %v348_v9  ;;  %v857_v4 = vld [vmem:[%s1557_s11 + $0x4] sm:$0xf]  ;;  %s1351_s8 = sshll.u32 %s1428_s16, 4  ;;  %s1352_s8 = int_to_ptr.vmem [resolvable:$false] %s1351_s8 }
  0xc3   : > { %709 = vrot.lane.b32.xlu0 %v707_v7, %s1425_s19  ;;  %p1350_p13 = pneg %p1349_p12  ;;  %p1354_p8 = scmp.lt.s32.totalorder %s1867_s10, %s1352_s8 }
  0xc4   : > { %v392_v13 = vpop.permute.xlu1 %391  ;;  %v882_v16 = vld [vmem:[#allocation2 + $0x30] sm:$0xff] }
  0xc5   : > { %394 = vst.msk [vmem:[#allocation2 + $0x68] sm:$0xf] %vm254_vm0, %v392_v13  ;;  %v1226_v17 = vpack.c.bf16 %v882_v16, %v878_v10  ;;  %v384_v18 = vpop.permute.xlu0 %383  ;;  %v880_v19 = vld [vmem:[#allocation2 + $0x20] sm:$0xff]  ;;  %v869_v10 = vld [vmem:[%s1557_s11 + $0xc] sm:$0xf] }
  0xc6   : > { %755 = vrot.lane.b32.xlu1 %v753_v11, %s1424_s17  ;;  %386 = vst.msk [vmem:[#allocation2 + $0x58] sm:$0xf0] %vm266_vm1, %v384_v18  ;;  %v1194_v21 = vpack.c.bf16 %v880_v19, %v876_v15  ;;  %v863_v16 = vld [vmem:[%s1557_s11 + $0x8] sm:$0xf] }
  0xc7   : > { %1227 = vmatpush1.bf16.msra.mxu1 %v1226_v17  ;;  %736 = vrot.lane.b32.xlu0 %v735_v14, %s1426_s20 }
  0xc8   : > { %v418_v22 = vpop.permute.xlu1 %417  ;;  %1195 = vmatpush1.bf16.msra.mxu0 %v1194_v21 }
  0xc9   : > { %420 = vst.msk [vmem:[#allocation2 + $0x68] sm:$0xf0] %vm266_vm1, %v418_v22  ;;  %v404_v25 = vpop.permute.xlu0 %403  ;;  %v885_v33 = vld [vmem:[#allocation2 + $0x48] sm:$0xff] }
  0xca   : > { %781 = vrot.lane.b32.xlu1 %v780_v20, %s1425_s19  ;;  %406 = vst.msk [vmem:[#allocation2 + $0x78] sm:$0xf] %vm254_vm0, %v404_v25  ;;  %v1427_v25 = vmov 0  }
  0xcb   : > { %767 = vrot.lane.b32.xlu0 %v765_v23, %s1424_s17  ;;  %1314 = vset.pattern.permute.xlu1 %v1427_v25 }
  0xcc   : > { %v342_v28 = vpop.permute.xlu1 %341  ;;  %1315 = vset.pattern.permute.xlu0 %v1427_v25 }
  0xcd   : > { %344 = vst.msk [vmem:[#allocation2 + $0x40] sm:$0xf] %vm254_vm0, %v342_v28  ;;  %v432_v30 = vpop.permute.xlu0 %431  ;;  %v887_v44 = vld [vmem:[#allocation2 + $0x58] sm:$0xff] }
  0xce   : > { %807 = vrot.lane.b32.xlu1 %v805_v26, %s1425_s19  ;;  %434 = vst.msk [vmem:[#allocation2 + $0x78] sm:$0xf0] %vm266_vm1, %v432_v30 }
  0xcf   : > { %795 = vrot.lane.b32.xlu0 %v794_v29, %s1425_s19 }
  0xd0   : > { %v377_v32 = vpop.permute.xlu1 %376  ;;  %v889_v34 = vld [vmem:[#allocation2 + $0x68] sm:$0xff] }
  0xd1   : > { %379 = vst.msk [vmem:[#allocation2 + $0x50] sm:$0xf0] %vm266_vm1, %v377_v32  ;;  %v1196_v35 = vpack.c.bf16 %v889_v34, %v885_v33  ;;  %v354_v38 = vpop.permute.xlu0 %353 }
  0xd2   : > { %833 = vrot.lane.b32.xlu1 %v832_v31, %s1426_s20  ;;  %356 = vst.msk [vmem:[#allocation2 + $0x50] sm:$0xf] %vm254_vm0, %v354_v38 }
  0xd3   : > { %1197 = vmatprep.subr.bf16.mxu0 %v1196_v35  ;;  %819 = vrot.lane.b32.xlu0 %v817_v36, %s1425_s19 }
  0xd4   : > { %v411_v41 = vpop.permute.xlu1 %410  ;;  %v884_v55 = vld [vmem:[#allocation2 + $0x40] sm:$0xff] }
  0xd5   : > { %413 = vst.msk [vmem:[#allocation2 + $0x60] sm:$0xf0] %vm266_vm1, %v411_v41  ;;  %v398_v43 = vpop.permute.xlu0 %397  ;;  %v891_v45 = vld [vmem:[#allocation2 + $0x78] sm:$0xff] }
  0xd6   : > { %749 = vrot.lane.b32.xlu1 %v747_v39, %s1424_s17  ;;  %400 = vst.msk [vmem:[#allocation2 + $0x70] sm:$0xf] %vm254_vm0, %v398_v43  ;;  %v1228_v47 = vpack.c.bf16 %v891_v45, %v887_v44 }
  0xd7   : > { %847 = vrot.lane.b32.xlu0 %v846_v42, %s1426_s20 }
  0xd8   : > { %v444_v48 = vpop.permute.xlu1 %443  ;;  %1229 = vmatprep.subr.bf16.mxu1 %v1228_v47 }
  0xd9   : > { %446 = vst.msk [vmem:[#allocation2 + $0x88] sm:$0xf] %vm254_vm0, %v444_v48  ;;  %v425_v51 = vpop.permute.xlu0 %424  ;;  %v886_v1 = vld [vmem:[#allocation2 + $0x50] sm:$0xff] }
  0xda   : > { %774 = vrot.lane.b32.xlu1 %v773_v46, %s1424_s17  ;;  %427 = vst.msk [vmem:[#allocation2 + $0x70] sm:$0xf0] %vm266_vm1, %v425_v51 }
  0xdb   : > { %761 = vrot.lane.b32.xlu0 %v759_v49, %s1424_s17 }
  0xdc   : > { %v470_v54 = vpop.permute.xlu1 %469  ;;  %v888_v56 = vld [vmem:[#allocation2 + $0x60] sm:$0xff] }
  0xdd   : > { %472 = vst.msk [vmem:[#allocation2 + $0x88] sm:$0xf0] %vm266_vm1, %v470_v54  ;;  %v1198_v58 = vpack.c.bf16 %v888_v56, %v884_v55  ;;  %v456_v59 = vpop.permute.xlu0 %455 }
  0xde   : > { %801 = vrot.lane.b32.xlu1 %v799_v52, %s1425_s19  ;;  %458 = vst.msk [vmem:[#allocation2 + $0x98] sm:$0xf] %vm254_vm0, %v456_v59 }
  0xdf   : > { %1199 = vmatpush1.bf16.msra.mxu0 %v1198_v58  ;;  %788 = vrot.lane.b32.xlu0 %v787_v57, %s1424_s17  ;;  %s1353_s17 = scalar_lea.vmem %s1352_s8, 256 }
  0xe0   : > { %v496_v61 = vpop.permute.xlu1 %495  ;;  %p1355_p10 = scmp.lt.s32.totalorder %s1353_s17, %s1347_s7 }
  0xe1   : > { %498 = vst.msk [vmem:[#allocation2 + $0xa8] sm:$0xf] %vm254_vm0, %v496_v61  ;;  %v484_v0 = vpop.permute.xlu0 %483  ;;  %v890_v2 = vld [vmem:[#allocation2 + $0x70] sm:$0xff] }
  0xe2   : > { %826 = vrot.lane.b32.xlu1 %v825_v60, %s1425_s19  ;;  %486 = vst.msk [vmem:[#allocation2 + $0x98] sm:$0xf0] %vm266_vm1, %v484_v0  ;;  %v1230_v3 = vpack.c.bf16 %v890_v2, %v886_v1  ;;  %p1356_p0 = por %p1355_p10, %p1354_p8 }
  0xe3   : > { %813 = vrot.lane.b32.xlu0 %v811_v62, %s1425_s19 }
  0xe4   : > { %v522_v5 = vpop.permute.xlu1 %521  ;;  %1231 = vmatpush1.bf16.msra.mxu1 %v1230_v3  ;;  %v893_v13 = vld [vmem:[#allocation2 + $0x88] sm:$0xff]  ;;  %p1357_p2 = pnand %p1356_p0, %p1350_p13 }
  0xe5   : > { %524 = vst.msk [vmem:[#allocation2 + $0xa8] sm:$0xf0] %vm266_vm1, %v522_v5  ;;  %v508_v7 = vpop.permute.xlu0 %507 }
  0xe6   : > { %859 = vrot.lane.b32.xlu1 %v857_v4, %s1426_s20  ;;  %510 = vst.msk [vmem:[#allocation2 + $0xb8] sm:$0xf] %vm254_vm0, %v508_v7 }
  0xe7   : > { %840 = vrot.lane.b32.xlu0 %v839_v6, %s1425_s19 }
  0xe8   : > { %v438_v9 = vpop.permute.xlu1 %437 }
  0xe9   : > { %440 = vst.msk [vmem:[#allocation2 + $0x80] sm:$0xf] %vm254_vm0, %v438_v9  ;;  %v536_v11 = vpop.permute.xlu0 %535  ;;  %v895_v20 = vld [vmem:[#allocation2 + $0x98] sm:$0xff] }
  0xea   : > { %853 = vrot.lane.b32.xlu1 %v851_v8, %s1426_s20  ;;  %538 = vst.msk [vmem:[#allocation2 + $0xb8] sm:$0xf0] %vm266_vm1, %v536_v11 }
  0xeb   : > { %871 = vrot.lane.b32.xlu0 %v869_v10, %s1426_s20 }
  0xec   : > { %v463_v12 = vpop.permute.xlu1 %462  ;;  %v897_v14 = vld [vmem:[#allocation2 + $0xa8] sm:$0xff] }
  0xed   : > { %465 = vst.msk [vmem:[#allocation2 + $0x80] sm:$0xf0] %vm266_vm1, %v463_v12  ;;  %v1200_v15 = vpack.c.bf16 %v897_v14, %v893_v13  ;;  %v450_v17 = vpop.permute.xlu0 %449 }
  0xee   : > { %452 = vst.msk [vmem:[#allocation2 + $0x90] sm:$0xf] %vm254_vm0, %v450_v17  ;;  %1088 = vperm.xlu1 %1314, %v1085_v24  }
  0xef   : > { %1201 = vmatprep.subr.bf16.mxu0 %v1200_v15  ;;  %865 = vrot.lane.b32.xlu0 %v863_v16, %s1426_s20 }
  0xf0   : > { %v490_v18 = vpop.permute.xlu1 %489 }
  0xf1   : > { %492 = vst.msk [vmem:[#allocation2 + $0xa0] sm:$0xf] %vm254_vm0, %v490_v18  ;;  %v477_v19 = vpop.permute.xlu0 %476  ;;  %v899_v21 = vld [vmem:[#allocation2 + $0xb8] sm:$0xff] }
  0xf2   : > { %479 = vst.msk [vmem:[#allocation2 + $0x90] sm:$0xf0] %vm266_vm1, %v477_v19  ;;  %v1232_v22 = vpack.c.bf16 %v899_v21, %v895_v20 }
  0xf4   : > { %v515_v23 = vpop.permute.xlu1 %514  ;;  %1233 = vmatprep.subr.bf16.mxu1 %v1232_v22  ;;  %v892_v30 = vld [vmem:[#allocation2 + $0x80] sm:$0xff] }
  0xf5   : > { %517 = vst.msk [vmem:[#allocation2 + $0xa0] sm:$0xf0] %vm266_vm1, %v515_v23  ;;  %v502_v26 = vpop.permute.xlu0 %501 }
  0xf6   : > { %504 = vst.msk [vmem:[#allocation2 + $0xb0] sm:$0xf] %vm254_vm0, %v502_v26 }
  0xf8   : > { %v548_v27 = vpop.permute.xlu1 %547 }
  0xf9   : > { %550 = vst.msk [vmem:[#allocation2 + $0xc8] sm:$0xf] %vm254_vm0, %v548_v27  ;;  %v529_v28 = vpop.permute.xlu0 %528  ;;  %v894_v36 = vld [vmem:[#allocation2 + $0x90] sm:$0xff] }
  0xfa   : > { %531 = vst.msk [vmem:[#allocation2 + $0xb0] sm:$0xf0] %vm266_vm1, %v529_v28 }
  0xfc   : > { %v574_v29 = vpop.permute.xlu1 %573  ;;  %v896_v31 = vld [vmem:[#allocation2 + $0xa0] sm:$0xff] }
  0xfd   : > { %576 = vst.msk [vmem:[#allocation2 + $0xc8] sm:$0xf0] %vm266_vm1, %v574_v29  ;;  %v1202_v32 = vpack.c.bf16 %v896_v31, %v892_v30  ;;  %v560_v33 = vpop.permute.xlu0 %559 }
  0xfe   : > { %562 = vst.msk [vmem:[#allocation2 + $0xd8] sm:$0xf] %vm254_vm0, %v560_v33 }
  0xff   : > { %1203 = vmatpush1.bf16.msra.mxu0 %v1202_v32 }
 0x100   : > { %v600_v34 = vpop.permute.xlu1 %599 }
 0x101   : > { %602 = vst.msk [vmem:[#allocation2 + $0xe8] sm:$0xf] %vm254_vm0, %v600_v34  ;;  %v588_v35 = vpop.permute.xlu0 %587  ;;  %v898_v37 = vld [vmem:[#allocation2 + $0xb0] sm:$0xff] }
 0x102   : > { %590 = vst.msk [vmem:[#allocation2 + $0xd8] sm:$0xf0] %vm266_vm1, %v588_v35  ;;  %v1234_v38 = vpack.c.bf16 %v898_v37, %v894_v36 }
 0x104   : > { %v626_v39 = vpop.permute.xlu1 %625  ;;  %1235 = vmatpush1.bf16.msra.mxu1 %v1234_v38  ;;  %v901_v44 = vld [vmem:[#allocation2 + $0xc8] sm:$0xff] }
 0x105   : > { %628 = vst.msk [vmem:[#allocation2 + $0xe8] sm:$0xf0] %vm266_vm1, %v626_v39  ;;  %v612_v40 = vpop.permute.xlu0 %611 }
 0x106   : > { %614 = vst.msk [vmem:[#allocation2 + $0xf8] sm:$0xf] %vm254_vm0, %v612_v40 }
 0x108   : > { %v542_v41 = vpop.permute.xlu1 %541 }
 0x109   : > { %544 = vst.msk [vmem:[#allocation2 + $0xc0] sm:$0xf] %vm254_vm0, %v542_v41  ;;  %v640_v42 = vpop.permute.xlu0 %639  ;;  %v903_v50 = vld [vmem:[#allocation2 + $0xd8] sm:$0xff] }
 0x10a   : > { %642 = vst.msk [vmem:[#allocation2 + $0xf8] sm:$0xf0] %vm266_vm1, %v640_v42 }
 0x10c   : > { %v567_v43 = vpop.permute.xlu1 %566  ;;  %v905_v45 = vld [vmem:[#allocation2 + $0xe8] sm:$0xff] }
 0x10d   : > { %569 = vst.msk [vmem:[#allocation2 + $0xc0] sm:$0xf0] %vm266_vm1, %v567_v43  ;;  %v1204_v46 = vpack.c.bf16 %v905_v45, %v901_v44  ;;  %v554_v47 = vpop.permute.xlu0 %553 }
 0x10e   : > { %556 = vst.msk [vmem:[#allocation2 + $0xd0] sm:$0xf] %vm254_vm0, %v554_v47 }
 0x10f   : > { %1205 = vmatprep.subr.bf16.mxu0 %v1204_v46 }
 0x110   : > { %v594_v48 = vpop.permute.xlu1 %593 }
 0x111   : > { %596 = vst.msk [vmem:[#allocation2 + $0xe0] sm:$0xf] %vm254_vm0, %v594_v48  ;;  %v581_v49 = vpop.permute.xlu0 %580  ;;  %v907_v51 = vld [vmem:[#allocation2 + $0xf8] sm:$0xff] }
 0x112   : > { %583 = vst.msk [vmem:[#allocation2 + $0xd0] sm:$0xf0] %vm266_vm1, %v581_v49  ;;  %v1236_v52 = vpack.c.bf16 %v907_v51, %v903_v50 }
 0x114   : > { %v619_v53 = vpop.permute.xlu1 %618  ;;  %1237 = vmatprep.subr.bf16.mxu1 %v1236_v52  ;;  %v900_v58 = vld [vmem:[#allocation2 + $0xc0] sm:$0xff] }
 0x115   : > { %621 = vst.msk [vmem:[#allocation2 + $0xe0] sm:$0xf0] %vm266_vm1, %v619_v53  ;;  %v606_v54 = vpop.permute.xlu0 %605 }
 0x116   : > { %608 = vst.msk [vmem:[#allocation2 + $0xf0] sm:$0xf] %vm254_vm0, %v606_v54 }
 0x118   : > { %v652_v55 = vpop.permute.xlu1 %651 }
 0x119   : > { %654 = vst.msk [vmem:[#allocation2 + $0x108] sm:$0xf] %vm254_vm0, %v652_v55  ;;  %v633_v56 = vpop.permute.xlu0 %632  ;;  %v902_v0 = vld [vmem:[#allocation2 + $0xd0] sm:$0xff] }
 0x11a   : > { %635 = vst.msk [vmem:[#allocation2 + $0xf0] sm:$0xf0] %vm266_vm1, %v633_v56  ;;  %v1316_v55 = vld [vmem:[#allocation2 + $0x190] sm:$0xff] }
 0x11c   : > { %v678_v57 = vpop.permute.xlu1 %677  ;;  %v904_v59 = vld [vmem:[#allocation2 + $0xe0] sm:$0xff] }
 0x11d   : > { %680 = vst.msk [vmem:[#allocation2 + $0x108] sm:$0xf0] %vm266_vm1, %v678_v57  ;;  %v1206_v60 = vpack.c.bf16 %v904_v59, %v900_v58  ;;  %v664_v61 = vpop.permute.xlu0 %663 }
 0x11e   : > { %666 = vst.msk [vmem:[#allocation2 + $0x118] sm:$0xf] %vm254_vm0, %v664_v61 }
 0x11f   : > { %1207 = vmatpush1.bf16.msra.mxu0 %v1206_v60 }
 0x120   : > { %v704_v62 = vpop.permute.xlu1 %703 }
 0x121   : > { %706 = vst.msk [vmem:[#allocation2 + $0x128] sm:$0xf] %vm254_vm0, %v704_v62  ;;  %v692_v63 = vpop.permute.xlu0 %691  ;;  %v906_v1 = vld [vmem:[#allocation2 + $0xf0] sm:$0xff]  ;;  %v1220_v62 = vpack.c.bf16 %v1316_v55, %v1316_v55 }
 0x122   : > { %694 = vst.msk [vmem:[#allocation2 + $0x118] sm:$0xf0] %vm266_vm1, %v692_v63  ;;  %v1238_v2 = vpack.c.bf16 %v906_v1, %v902_v0 }
 0x124   : > { %v730_v3 = vpop.permute.xlu1 %729  ;;  %1239 = vmatpush1.bf16.msra.mxu1 %v1238_v2  ;;  %v909_v8 = vld [vmem:[#allocation2 + $0x108] sm:$0xff] }
 0x125   : > { %732 = vst.msk [vmem:[#allocation2 + $0x128] sm:$0xf0] %vm266_vm1, %v730_v3  ;;  %v716_v4 = vpop.permute.xlu0 %715 }
 0x126   : > { %718 = vst.msk [vmem:[#allocation2 + $0x138] sm:$0xf] %vm254_vm0, %v716_v4  ;;  %v875_v4 = vld [vmem:[%s1909_s0] sm:$0xff] }
 0x128   : > { %v646_v5 = vpop.permute.xlu1 %645 }
 0x129   : > { %648 = vst.msk [vmem:[#allocation2 + $0x100] sm:$0xf] %vm254_vm0, %v646_v5  ;;  %v744_v6 = vpop.permute.xlu0 %743  ;;  %v911_v14 = vld [vmem:[#allocation2 + $0x118] sm:$0xff] }
 0x12a   : > { %746 = vst.msk [vmem:[#allocation2 + $0x138] sm:$0xf0] %vm266_vm1, %v744_v6 }
 0x12c   : > { %v671_v7 = vpop.permute.xlu1 %670  ;;  %v913_v9 = vld [vmem:[#allocation2 + $0x128] sm:$0xff] }
 0x12d   : > { %673 = vst.msk [vmem:[#allocation2 + $0x100] sm:$0xf0] %vm266_vm1, %v671_v7  ;;  %v1208_v10 = vpack.c.bf16 %v913_v9, %v909_v8  ;;  %v658_v11 = vpop.permute.xlu0 %657 }
 0x12e   : > { %660 = vst.msk [vmem:[#allocation2 + $0x110] sm:$0xf] %vm254_vm0, %v658_v11 }
 0x12f   : > { %1209 = vmatprep.subr.bf16.mxu0 %v1208_v10 }
 0x130   : > { %v698_v12 = vpop.permute.xlu1 %697 }
 0x131   : > { %700 = vst.msk [vmem:[#allocation2 + $0x120] sm:$0xf] %vm254_vm0, %v698_v12  ;;  %v685_v13 = vpop.permute.xlu0 %684  ;;  %v915_v15 = vld [vmem:[#allocation2 + $0x138] sm:$0xff] }
 0x132   : > { %687 = vst.msk [vmem:[#allocation2 + $0x110] sm:$0xf0] %vm266_vm1, %v685_v13  ;;  %v1240_v16 = vpack.c.bf16 %v915_v15, %v911_v14 }
 0x134   : > { %v723_v17 = vpop.permute.xlu1 %722  ;;  %1241 = vmatprep.subr.bf16.mxu1 %v1240_v16  ;;  %v908_v22 = vld [vmem:[#allocation2 + $0x100] sm:$0xff] }
 0x135   : > { %725 = vst.msk [vmem:[#allocation2 + $0x120] sm:$0xf0] %vm266_vm1, %v723_v17  ;;  %v710_v18 = vpop.permute.xlu0 %709 }
 0x136   : > { %712 = vst.msk [vmem:[#allocation2 + $0x130] sm:$0xf] %vm254_vm0, %v710_v18 }
 0x138   : > { %v756_v19 = vpop.permute.xlu1 %755 }
 0x139   : > { %758 = vst.msk [vmem:[#allocation2 + $0x148] sm:$0xf] %vm254_vm0, %v756_v19  ;;  %v737_v20 = vpop.permute.xlu0 %736  ;;  %v910_v28 = vld [vmem:[#allocation2 + $0x110] sm:$0xff] }
 0x13a   : > { %739 = vst.msk [vmem:[#allocation2 + $0x130] sm:$0xf0] %vm266_vm1, %v737_v20 }
 0x13c   : > { %v782_v21 = vpop.permute.xlu1 %781  ;;  %v912_v23 = vld [vmem:[#allocation2 + $0x120] sm:$0xff] }
 0x13d   : > { %784 = vst.msk [vmem:[#allocation2 + $0x148] sm:$0xf0] %vm266_vm1, %v782_v21  ;;  %v1210_v24 = vpack.c.bf16 %v912_v23, %v908_v22  ;;  %v768_v25 = vpop.permute.xlu0 %767 }
 0x13e   : > { %770 = vst.msk [vmem:[#allocation2 + $0x158] sm:$0xf] %vm254_vm0, %v768_v25 }
 0x13f   : > { %1211 = vmatpush1.bf16.msra.mxu0 %v1210_v24 }
 0x140   : > { %v808_v26 = vpop.permute.xlu1 %807 }
 0x141   : > { %810 = vst.msk [vmem:[#allocation2 + $0x168] sm:$0xf] %vm254_vm0, %v808_v26  ;;  %v796_v27 = vpop.permute.xlu0 %795  ;;  %v914_v29 = vld [vmem:[#allocation2 + $0x130] sm:$0xff] }
 0x142   : > { %798 = vst.msk [vmem:[#allocation2 + $0x158] sm:$0xf0] %vm266_vm1, %v796_v27  ;;  %v1242_v30 = vpack.c.bf16 %v914_v29, %v910_v28 }
 0x144   : > { %v834_v31 = vpop.permute.xlu1 %833  ;;  %1243 = vmatpush1.bf16.msra.mxu1 %v1242_v30  ;;  %v917_v36 = vld [vmem:[#allocation2 + $0x148] sm:$0xff] }
 0x145   : > { %836 = vst.msk [vmem:[#allocation2 + $0x168] sm:$0xf0] %vm266_vm1, %v834_v31  ;;  %v820_v32 = vpop.permute.xlu0 %819 }
 0x146   : > { %822 = vst.msk [vmem:[#allocation2 + $0x178] sm:$0xf] %vm254_vm0, %v820_v32 }
 0x148   : > { %v750_v33 = vpop.permute.xlu1 %749 }
 0x149   : > { %752 = vst.msk [vmem:[#allocation2 + $0x140] sm:$0xf] %vm254_vm0, %v750_v33  ;;  %v848_v34 = vpop.permute.xlu0 %847  ;;  %v919_v42 = vld [vmem:[#allocation2 + $0x158] sm:$0xff] }
 0x14a   : > { %850 = vst.msk [vmem:[#allocation2 + $0x178] sm:$0xf0] %vm266_vm1, %v848_v34 }
 0x14c   : > { %v775_v35 = vpop.permute.xlu1 %774  ;;  %v921_v37 = vld [vmem:[#allocation2 + $0x168] sm:$0xff] }
 0x14d   : > { %777 = vst.msk [vmem:[#allocation2 + $0x140] sm:$0xf0] %vm266_vm1, %v775_v35  ;;  %v1212_v38 = vpack.c.bf16 %v921_v37, %v917_v36  ;;  %v762_v39 = vpop.permute.xlu0 %761 }
 0x14e   : > { %764 = vst.msk [vmem:[#allocation2 + $0x150] sm:$0xf] %vm254_vm0, %v762_v39 }
 0x14f   : > { %1213 = vmatprep.subr.bf16.mxu0 %v1212_v38 }
 0x150   : > { %v802_v40 = vpop.permute.xlu1 %801 }
 0x151   : > { %804 = vst.msk [vmem:[#allocation2 + $0x160] sm:$0xf] %vm254_vm0, %v802_v40  ;;  %v789_v41 = vpop.permute.xlu0 %788  ;;  %v923_v43 = vld [vmem:[#allocation2 + $0x178] sm:$0xff] }
 0x152   : > { %791 = vst.msk [vmem:[#allocation2 + $0x150] sm:$0xf0] %vm266_vm1, %v789_v41  ;;  %v1244_v44 = vpack.c.bf16 %v923_v43, %v919_v42 }
 0x154   : > { %v827_v45 = vpop.permute.xlu1 %826  ;;  %1245 = vmatprep.subr.bf16.mxu1 %v1244_v44  ;;  %v916_v49 = vld [vmem:[#allocation2 + $0x140] sm:$0xff] }
 0x155   : > { %829 = vst.msk [vmem:[#allocation2 + $0x160] sm:$0xf0] %vm266_vm1, %v827_v45  ;;  %v814_v46 = vpop.permute.xlu0 %813 }
 0x156   : > { %816 = vst.msk [vmem:[#allocation2 + $0x170] sm:$0xf] %vm254_vm0, %v814_v46 }
 0x158   : > { %v860_v47 = vpop.permute.xlu1 %859 }
 0x159   : > { %862 = vst.msk [vmem:[#allocation2 + $0x188] sm:$0xf] %vm254_vm0, %v860_v47  ;;  %v841_v48 = vpop.permute.xlu0 %840  ;;  %v918_v58 = vld [vmem:[#allocation2 + $0x150] sm:$0xff] }
 0x15a   : > { %843 = vst.msk [vmem:[#allocation2 + $0x170] sm:$0xf0] %vm266_vm1, %v841_v48 }
 0x15c   : > { %v920_v50 = vld [vmem:[#allocation2 + $0x160] sm:$0xff]  ;;  %v854_v51 = vpop.permute.xlu1 %853 }
 0x15d   : > { %v1214_v52 = vpack.c.bf16 %v920_v50, %v916_v49  ;;  %856 = vst.msk [vmem:[#allocation2 + $0x180] sm:$0xf] %vm254_vm0, %v854_v51  ;;  %v872_v53 = vpop.permute.xlu0 %871 }
 0x15e   : > { %874 = vst.msk [vmem:[#allocation2 + $0x198] sm:$0xf] %vm254_vm0, %v872_v53 }
 0x15f   : > { %1215 = vmatpush1.bf16.msra.mxu0 %v1214_v52 }
 0x160   : > { %v925_v54 = vld [vmem:[#allocation2 + $0x188] sm:$0xff] }
 0x161   : > { %v1216_v56 = vpack.c.bf16 %v1316_v55, %v925_v54  ;;  %v866_v57 = vpop.permute.xlu0 %865  ;;  %v922_v59 = vld [vmem:[#allocation2 + $0x170] sm:$0xff] }
 0x162   : > { %868 = vst.msk [vmem:[#allocation2 + $0x190] sm:$0xf] %vm254_vm0, %v866_v57  ;;  %v1246_v60 = vpack.c.bf16 %v922_v59, %v918_v58 }
 0x163   : > { %1217 = vmatprep.subr.bf16.mxu0 %v1216_v56 }
 0x164   : > { %v924_v61 = vld [vmem:[#allocation2 + $0x180] sm:$0xff]  ;;  %1247 = vmatpush1.bf16.msra.mxu1 %v1246_v60 }
 0x165   : > { %v1218_v63 = vpack.c.bf16 %v1316_v55, %v924_v61  ;;  %v927_v0 = vld [vmem:[#allocation2 + $0x198] sm:$0xff] }
 0x166   : > { %v1248_v1 = vpack.c.bf16 %v1316_v55, %v927_v0 }
 0x167   : > { %1219 = vmatpush1.bf16.msra.mxu0 %v1218_v63 }
 0x168   : > { %1221 = vmatprep.subr.bf16.mxu0 %v1220_v62  ;;  %1249 = vmatprep.subr.bf16.mxu1 %v1248_v1 }
 0x169   : > { %v926_v2 = vld [vmem:[#allocation2 + $0x190] sm:$0xff] }
 0x16a   : > { %v1250_v3 = vpack.c.bf16 %v1316_v55, %v926_v2 }
 0x16b   : > { %1223 = vmatpush1.bf16.msra.mxu0 %v1220_v62 }
 0x16c   : > { %1251 = vmatpush1.bf16.msra.mxu1 %v1250_v3 }
 0x16d   : > { %1253 = vmatprep.subr.bf16.mxu1 %v1220_v62  ;;  %v1089_v11 = vpop.permute.xlu1 %1088 }
 0x16e   : > { %1005 = vmatmul.mubr.f32.vlgmr.msra.gmra.mrb[0].mxu0 %v875_v4 }
 0x170   : > { %1255 = vmatpush1.bf16.msra.mxu1 %v1220_v62 }
 0x173   : > { %1076 = vmatmul.mubr.f32.vlgmr.msra.gmra.mrb[0].mxu1 %v875_v4 }
 0x241   : > { %v1006_v5 = vpop.f32.mrb[0].mxu0 }
 0x242   : > { %v1008_v6 = vpop.f32.mrb[1].mxu0 }
 0x243   : > { %v1082_v7 = vmax.f32 %v1006_v5, %v1008_v6 }
 0x246   : > { %v1077_v8 = vpop.f32.mrb[0].mxu1 }
 0x247   : > { %v1079_v9 = vpop.f32.mrb[1].mxu1 }
 0x248   : > { %v1083_v10 = vmax.f32 %v1077_v8, %v1079_v9 }
 0x24a   : > { %v1084_v12 = vmax.f32 %v1082_v7, %v1083_v10 }
 0x24c   : > { %v1091_v13 = vadd.f32 %v1089_v11, %v1084_v12 }
 0x24e   : > { %v1092_v14 = vmax.f32 %v1091_v13, 0.0 }
 0x250   : > { %1093 = vst [vmem:[%s188_s9] sm:$0xff] %v1092_v14 }
 0x251   : > { %1360 = shalt.err (!%p1357_p2)
}
 0x252   : > { %s1361_s5 = scalar_lea.hbm %s1865_s4, 128  ;;  %s1365_s22 = scalar_lea.hbm %s1912_s3, 256 }
 0x253   : > { %p1362_p4 = scmp.ne.s32.totalorder %s1865_s4, %s1361_s5  ;;  %p1366_p9 = scmp.lt.u32.totalorder %s1865_s4, %s1912_s3 }
 0x254   : > { %p1367_p1 = scmp.lt.u32.totalorder %s1365_s22, %s1361_s5  ;;  %p1369_p6 = scmp.lt.u32.totalorder %s1361_s5, %s1865_s4 }
 0x255   : > { %p1363_p5 = pnand %p1362_p4, %p1919_p11 }
 0x256   : > { %p1368_p3 = por %p1367_p1, %p1366_p9 }
 0x257   : > { %p1364_p7 = pneg %p1363_p5 }
 0x258   : > { %p1370_p12 = por %p1369_p6, %p1368_p3 }
 0x25a   : > { %p1371_p13 = pnand %p1370_p12, %p1364_p7 }
 0x25c   : > { %1374 = shalt.err (!%p1371_p13)
}
 0x25d   : > { %1258 = dma.vmem_to_hbm [thread:$0]  (%p1919_p11), %s1867_s10, 128, %s1865_s4, %s1095_s6  }
 0x25e PF: > { %s1120_s28 = sand.u32 1, %s1401_s12   ;;  %p1920_p8 = scmp.ne.s32.totalorder %s1917_s25, 0 }
 0x25f   : > { %p1921_p10 = scmp.ge.s32.totalorder %s1413_s15, 2  ;;  %s1121_s29 = scalar_lea.sflag [#allocation5], %s1120_s28 }
 0x261   : > { %p1265_p0 = pnand %p1921_p10, %p1920_p8 }
 0x263   : > { %1396 = dma.done.wait (!%p1265_p0), %s1121_s29, 128  }
 0x264   : > { %1398 = vsyncadd (!%p1265_p0), %s1121_s29, 4294967168  ;;  %p16_p2 = scmp.ge.s32.totalorder %s1474_s18, 4   ;;  %s1922_s12 = smov %s1405_s13 }
 0x265   : > { %s1923_s13 = smov %s1409_s14  ;;  %s1924_s14 = smov %s1486_s21 }
 0x266   : > { %s1925_s15 = smov %s1474_s18  ;;  %18 = sbr.rel (!%p16_p2) target bundleno = 5 (0x5), region = 77 }
 0x26d   :  { %1126 = vsyncpa [#allocation4], 1 }
 0x26e   :  { %1128 = vsyncpa [#allocation4 + $0x1], 1 }
 0x26f   :  { %1129 = vsyncpa [#allocation5], 1 }
 0x270   :  { %1131 = vsyncpa [#allocation5 + $0x1], 1 }

</bundles_post_ra>
